<compile_context>
chip_gen: v7x
topology: tpu7x:2x2x1
jax: 0.10.0
libtpu: 0.0.40
codegen_flags: <defaults>
</compile_context>

<pallas_src>
import jax
import jax.numpy as jnp
from jax import lax
from jax.experimental import pallas as pl
from jax.experimental.pallas import tpu as pltpu


def _round_up(x, m):
    return (x + m - 1) // m * m


def conv_maxpool(x, w, b):
    """One ConvMaxpool block. x: (N, D, H, W, Cin) float32, D/H/W even.

    Returns (N, D//2, H//2, W//2, Cout) float32."""
    N, D, H, W, Cin = x.shape
    Cout = w.shape[0]
    F = 27 * Cin
    D2, H2, W2 = D // 2, H // 2, W // 2
    R8 = D2 * H2 * W2
    Cp = _round_up(max(Cout, 128), 128)          # lane-dense output channel width

    # --- glue: im2col patch extraction + parity grouping (pure data movement, bf16) ---
    xb = x.astype(jnp.bfloat16)                   # cast first: halves glue HBM traffic
    xp = jnp.pad(xb, ((0, 0), (1, 1), (1, 1), (1, 1), (0, 0)))
    shifts = [xp[:, kd:kd + D, kh:kh + H, kw:kw + W, :]
              for kd in range(3) for kh in range(3) for kw in range(3)]
    patches = jnp.concatenate(shifts, axis=-1)            # (N, D, H, W, 27*Cin)
    patches = patches.reshape(N, D2, 2, H2, 2, W2, 2, F)
    patches = patches.transpose(0, 2, 4, 6, 1, 3, 5, 7)   # (N, 2,2,2, D2,H2,W2, F)
    patches = patches.reshape(N, 8 * R8, F)                # row = parity*R8 + voxel

    # torch weight (Cout, Cin, kd, kh, kw) -> (kd, kh, kw, Cin, Cout) -> (F, Cp) bf16
    w2 = jnp.transpose(w, (2, 3, 4, 1, 0)).reshape(F, Cout)
    w2 = jnp.pad(w2, ((0, 0), (0, Cp - Cout))).astype(jnp.bfloat16)
    b2 = jnp.pad(b, (0, Cp - Cout)).reshape(1, Cp).astype(jnp.float32)

    def kernel(p_ref, w_ref, b_ref, o_ref):
        # p_ref: (1, 8*R8, F) bf16 patches for one sample
        # w_ref: (F, Cp) bf16, b_ref: (1, Cp) f32, o_ref: (1, R8, Cp) f32
        y = jnp.dot(p_ref[0], w_ref[...],
                    preferred_element_type=jnp.float32)    # (8*R8, Cp), f32 accum
        m = y[0:R8]
        for p in range(1, 8):                               # 2x2x2 max-pool over parity
            m = jnp.maximum(m, y[p * R8:(p + 1) * R8])
        m = m + b_ref[...]                                  # bias after max: identical
        o_ref[0] = jnp.where(m >= 0.0, m, 0.01 * m)         # LeakyReLU(0.01)

    out = pl.pallas_call(
        kernel,
        out_shape=jax.ShapeDtypeStruct((N, R8, Cp), jnp.float32),
        grid_spec=pltpu.PrefetchScalarGridSpec(
            num_scalar_prefetch=0,
            grid=(N,),
            in_specs=[
                pl.BlockSpec((1, 8 * R8, F), lambda n: (n, 0, 0)),
                pl.BlockSpec((F, Cp), lambda n: (0, 0)),
                pl.BlockSpec((1, Cp), lambda n: (0, 0)),
            ],
            out_specs=pl.BlockSpec((1, R8, Cp), lambda n: (n, 0, 0)),
        ),
        compiler_params=pltpu.CompilerParams(
            dimension_semantics=("parallel",)),
    )(patches, w2, b2)

    out = out[:, :, :Cout]                                   # drop lane padding
    return out.reshape(N, D2, H2, W2, Cout)


def init_params(key, input_channels, downarm_channels):
    """Deterministic synthetic parameters (Conv3d k=3 weights/biases)."""
    params = []
    cin = input_channels
    for cout in downarm_channels:
        key, kw, kb = jax.random.split(key, 3)
        w = jax.random.normal(kw, (cout, cin, 3, 3, 3), jnp.float32) * 0.1
        b = jax.random.normal(kb, (cout,), jnp.float32) * 0.1
        params.append((w, b))
        cin = cout
    return params


def simple_cnn_forward(x_ncdhw, params, input_shape):
    """SimpleCNN.forward: sequence of ConvMaxpool blocks. x: (N, C, D, H, W)."""
    assert x_ncdhw.shape[-3:] == tuple(input_shape)
    x = jnp.transpose(x_ncdhw, (0, 2, 3, 4, 1))  # NCDHW -> NDHWC
    for w, b in params:
        x = conv_maxpool(x, w, b)
    return jnp.transpose(x, (0, 4, 1, 2, 3))     # NDHWC -> NCDHW


def reference_forward(x, params):
    """Pure-JAX reference with the same TPU-native numerics (bf16 MXU operands,
    f32 accumulation), so it matches the kernel up to summation order."""
    def bf16_round(a):
        return a.astype(jnp.bfloat16).astype(jnp.float32)

    for w, b in params:
        y = lax.conv_general_dilated(
            bf16_round(x), bf16_round(w), window_strides=(1, 1, 1),
            padding=((1, 1),) * 3,
            dimension_numbers=("NCDHW", "OIDHW", "NCDHW"),
            precision=lax.Precision.HIGHEST)
        y = y + b.reshape(1, -1, 1, 1, 1)
        y = jnp.where(y >= 0.0, y, 0.01 * y)
        x = lax.reduce_window(y, -jnp.inf, lax.max,
                              (1, 1, 2, 2, 2), (1, 1, 2, 2, 2), "VALID")
    return x


if __name__ == "__main__":
    key = jax.random.PRNGKey(0)
    input_shape = (8, 16, 16)        # (D, H, W)
    input_channels = 2
    downarm_channels = [4, 8]
    batch = 2

    kx, kp = jax.random.split(key)
    x = jax.random.normal(kx, (batch, input_channels) + input_shape, jnp.float32)
    params = init_params(kp, input_channels, downarm_channels)

    out = simple_cnn_forward(x, params, input_shape)
    out = jax.block_until_ready(out)

    expected_shape = (batch, downarm_channels[-1],
                      input_shape[0] // 4, input_shape[1] // 4, input_shape[2] // 4)
    assert out.shape == expected_shape, (out.shape, expected_shape)

    ref = reference_forward(x, params)
    if not jnp.allclose(out, ref, atol=5e-3, rtol=5e-3):
        raise SystemExit("mismatch vs reference: max abs diff = %e"
                         % float(jnp.max(jnp.abs(out - ref))))

    print("KERNEL_OK")
</pallas_src>

<mosaic_0001>
module attributes {stable_mosaic.version = 11 : i64} {
  func.func @kernel(%arg0: i32, %arg1: memref<1x2048x54xbf16, #tpu.memory_space<vmem>>, %arg2: memref<54x128xbf16, #tpu.memory_space<vmem>>, %arg3: memref<1x128xf32, #tpu.memory_space<vmem>>, %arg4: memref<1x256x128xf32, #tpu.memory_space<vmem>>) attributes {dimension_semantics = [#tpu.dimension_semantics<parallel>], iteration_bounds = array<i64: 2>, scalar_prefetch = 0 : i64, scratch_operands = 0 : i64, tpu.core_type = #tpu.core_type<tc>, window_params = [{transform_indices = @transform_0, window_bounds = array<i64: 1, 2048, 54>}, {pipeline_mode = #tpu.pipeline_mode<synchronous>, transform_indices = @transform_1, window_bounds = array<i64: 54, 128>}, {pipeline_mode = #tpu.pipeline_mode<synchronous>, transform_indices = @transform_2, window_bounds = array<i64: 1, 128>}, {transform_indices = @transform_3, window_bounds = array<i64: 1, 256, 128>}]} {
    %c0 = arith.constant 0 : index
    %c0_0 = arith.constant 0 : index
    %c0_1 = arith.constant 0 : index
    %0 = vector.load %arg1[%c0, %c0_0, %c0_1] : memref<1x2048x54xbf16, #tpu.memory_space<vmem>>, vector<1x2048x54xbf16>
    %1 = vector.shape_cast %0 : vector<1x2048x54xbf16> to vector<2048x54xbf16>
    %c0_2 = arith.constant 0 : index
    %c0_3 = arith.constant 0 : index
    %2 = vector.load %arg2[%c0_2, %c0_3] : memref<54x128xbf16, #tpu.memory_space<vmem>>, vector<54x128xbf16>
    %cst = arith.constant dense<0.000000e+00> : vector<2048x128xf32>
    %3 = tpu.matmul %1, %2, %cst {dimension_numbers = #tpu.dot_dimension_numbers<[1], [0], [0], [1], [0, 0, 1, 1], [], []>} : vector<2048x54xbf16>, vector<54x128xbf16>, vector<2048x128xf32> -> vector<2048x128xf32>
    %4 = vector.extract_strided_slice %3 {offsets = [0, 0], sizes = [256, 128], strides = [1, 1]} : vector<2048x128xf32> to vector<256x128xf32>
    %5 = vector.extract_strided_slice %3 {offsets = [256, 0], sizes = [256, 128], strides = [1, 1]} : vector<2048x128xf32> to vector<256x128xf32>
    %6 = arith.maximumf %4, %5 : vector<256x128xf32>
    %7 = vector.extract_strided_slice %3 {offsets = [512, 0], sizes = [256, 128], strides = [1, 1]} : vector<2048x128xf32> to vector<256x128xf32>
    %8 = arith.maximumf %6, %7 : vector<256x128xf32>
    %9 = vector.extract_strided_slice %3 {offsets = [768, 0], sizes = [256, 128], strides = [1, 1]} : vector<2048x128xf32> to vector<256x128xf32>
    %10 = arith.maximumf %8, %9 : vector<256x128xf32>
    %11 = vector.extract_strided_slice %3 {offsets = [1024, 0], sizes = [256, 128], strides = [1, 1]} : vector<2048x128xf32> to vector<256x128xf32>
    %12 = arith.maximumf %10, %11 : vector<256x128xf32>
    %13 = vector.extract_strided_slice %3 {offsets = [1280, 0], sizes = [256, 128], strides = [1, 1]} : vector<2048x128xf32> to vector<256x128xf32>
    %14 = arith.maximumf %12, %13 : vector<256x128xf32>
    %15 = vector.extract_strided_slice %3 {offsets = [1536, 0], sizes = [256, 128], strides = [1, 1]} : vector<2048x128xf32> to vector<256x128xf32>
    %16 = arith.maximumf %14, %15 : vector<256x128xf32>
    %17 = vector.extract_strided_slice %3 {offsets = [1792, 0], sizes = [256, 128], strides = [1, 1]} : vector<2048x128xf32> to vector<256x128xf32>
    %18 = arith.maximumf %16, %17 : vector<256x128xf32>
    %c0_4 = arith.constant 0 : index
    %c0_5 = arith.constant 0 : index
    %19 = vector.load %arg3[%c0_4, %c0_5] : memref<1x128xf32, #tpu.memory_space<vmem>>, vector<1x128xf32>
    %20 = vector.broadcast %19 : vector<1x128xf32> to vector<256x128xf32>
    %21 = arith.addf %18, %20 : vector<256x128xf32>
    %cst_6 = arith.constant 0.000000e+00 : f32
    %22 = vector.broadcast %cst_6 : f32 to vector<256x128xf32>
    %23 = arith.cmpf oge, %21, %22 : vector<256x128xf32>
    %cst_7 = arith.constant 0.00999999977 : f32
    %24 = vector.broadcast %cst_7 : f32 to vector<256x128xf32>
    %25 = arith.mulf %24, %21 : vector<256x128xf32>
    %26 = arith.select %23, %21, %25 : vector<256x128xi1>, vector<256x128xf32>
    %c0_8 = arith.constant 0 : index
    %c0_9 = arith.constant 0 : index
    %c0_10 = arith.constant 0 : index
    %27 = vector.load %arg4[%c0_8, %c0_9, %c0_10] : memref<1x256x128xf32, #tpu.memory_space<vmem>>, vector<1x256x128xf32>
    %28 = vector.shape_cast %27 : vector<1x256x128xf32> to vector<256x128xf32>
    %29 = vector.shape_cast %26 : vector<256x128xf32> to vector<1x256x128xf32>
    tpu.vector_store %arg4[%c0_8, %c0_9, %c0_10], %29 {strides = array<i32>} : memref<1x256x128xf32, #tpu.memory_space<vmem>>, vector<1x256x128xf32>,
    return
  }
  func.func @transform_0(%arg0: i32) -> (i32, i32, i32) {
    %c0_i32 = arith.constant 0 : i32
    %c0_i32_0 = arith.constant 0 : i32
    %c0_i32_1 = arith.constant 0 : i32
    return %arg0, %c0_i32, %c0_i32_0 : i32, i32, i32
  }
  func.func @transform_1(%arg0: i32) -> (i32, i32) {
    %c0_i32 = arith.constant 0 : i32
    %c0_i32_0 = arith.constant 0 : i32
    %c0_i32_1 = arith.constant 0 : i32
    return %c0_i32, %c0_i32_0 : i32, i32
  }
  func.func @transform_2(%arg0: i32) -> (i32, i32) {
    %c0_i32 = arith.constant 0 : i32
    %c0_i32_0 = arith.constant 0 : i32
    %c0_i32_1 = arith.constant 0 : i32
    return %c0_i32, %c0_i32_0 : i32, i32
  }
  func.func @transform_3(%arg0: i32) -> (i32, i32, i32) {
    %c0_i32 = arith.constant 0 : i32
    %c0_i32_0 = arith.constant 0 : i32
    %c0_i32_1 = arith.constant 0 : i32
    return %arg0, %c0_i32, %c0_i32_0 : i32, i32, i32
  }
}

</mosaic_0001>

<bundles_post_ra>
// kernel: tpu_custom_call.1
= control target key start
LH: loop header
LB: loop body
LE: loop exit
PB: predicated region body
PF: predicated region fallthrough
CT: control target
= control target key end

     0   :  { %8 = vsyncpa [#allocation3], 0  ;;  %s5147_s0 = inlined_call_operand.vmem [shape: bf16[2,2048,54], index: 0, kind: input, shape index: {}]   ;;  %s5148_s1 = inlined_call_operand.vmem [shape: bf16[54,128], index: 1, kind: input, shape index: {}]   ;;  %s5149_s2 = inlined_call_operand.vmem [shape: f32[1,128], index: 2, kind: input, shape index: {}]   ;;  %s5150_s3 = inlined_call_operand.hbm [shape: f32[2,256,128], index: 3, kind: output, shape index: {}]  }
   0x1   :  { %10 = vsyncpa [#allocation3 + $0x1], 0  ;;  %s3948_s12 = smov 0   ;;  %s3950_s13 = smov 0  }
   0x2   :  { %s3952_s14 = smov 0   ;;  %s3954_s15 = smov 0  }
   0x3 LB: > { %s3969_s16 = sadd.s32 4294967295, %s3923_s15   ;;  %s3007_s17 = sadd.s32 4294967294, %s3923_s15   ;;  %s3923_s15 = sphi %s3954_s15, %s5394_s15   ;;  %s3919_s14 = sphi %s3952_s14, %s5393_s14   ;;  %s3915_s13 = sphi %s3950_s13, %s5392_s13   ;;  %s3911_s12 = sphi %s3948_s12, %s5391_s12  }
   0x4   : > { %s3973_s18 = sadd.s32 1, %s3923_s15   ;;  %s91_s19 = sadd.s32 1, %s3919_s14 }
   0x5   : > { %s88_s20 = ssub.s32 %s3923_s15, %s3973_s18  ;;  %p101_p0 = scmp.ne.s32.totalorder %s3919_s14, %s3915_s13 }
   0x6   : > { %p89_p1 = scmp.eq.s32.totalorder %s88_s20, 0  ;;  %p102_p2 = scmp.eq.s32.totalorder %s3969_s16, 1 }
   0x7   : > { %p107_p3 = scmp.ne.s32.totalorder %s3915_s13, %s3911_s12  ;;  %p108_p4 = scmp.eq.s32.totalorder %s3007_s17, 1 }
   0x8   : > { %s3984_s21 = scalar_select %p89_p1, %s3919_s14, %s91_s19  }
   0x9   : > { %p3986_p5 = por %p102_p2, %p101_p0  ;;  %p3990_p6 = por %p108_p4, %p107_p3 }
   0xa   : > { %p3010_p7 = scmp.ge.s32.totalorder %s3923_s15, 1  ;;  %p140_p8 = scmp.lt.s32.totalorder %s3923_s15, 3 }
   0xc   : > { %p141_p9 = pnand %p3010_p7, %p140_p8 }
   0xe   : > { %144 = sbr.rel (%p141_p9) target bundleno = 539 (0x21b), region = 32 }
  0x15   : > { %v3729_v0 = vld [vmem:[%s5148_s1] sm:$0xff]   ;;  %v3730_v1 = vld [vmem:[%s5148_s1 + $0x8] sm:$0xff]   ;;  %p164_p10 = scmp.lt.s32.totalorder %s3969_s16, 1  ;;  %v3731_v2 = vld [vmem:[%s5148_s1 + $0x10] sm:$0xff]   ;;  %vm1094_vm0 = vcmask 441344   ;;  %vm1479_vm1 = vcmask 1042432  }
  0x16   : > { %3414 = vmatprep.subr.bf16.mxu0 %v3729_v0  ;;  %3678 = vmatprep.subr.bf16.mxu1 %v3729_v0  ;;  %v3732_v3 = vld [vmem:[%s5148_s1 + $0x18] ss:$0 sps:$4 sm:$0x77]   ;;  %s161_s10 = sand.u32 1, %s3915_s13   ;;  %s3281_s24 = sshll.u32 %s3969_s16, 12 }
  0x17   : > { %3415 = vmatpush3.bf16.msra.mxu0 %v3729_v0  ;;  %3682 = vmatpush3.bf16.msra.mxu1 %v3729_v0  ;;  %s165_s28 = scalar_select %p164_p10, %s3969_s16, 1  ;;  %v1481_v6 = vsel %vm1479_vm1, %v3732_v3, 0 }
  0x18   : > { %3416 = vmatprep.subr.bf16.mxu0 %v3730_v1  ;;  %3679 = vmatprep.subr.bf16.mxu1 %v3730_v1  ;;  %s3011_s19 = sshll.u32 %s161_s10, 8  ;;  %s5098_s27 = scalar_lea.hbm %s5150_s3, %s3281_s24 }
  0x19   : > { %s3280_s4 = sshll.u32 %s165_s28, 10  ;;  %s4860_s20 = scalar_lea.vmem [#allocation2], %s3011_s19 }
  0x1a   : > { %s4013_s9 = scalar_lea.vmem %s5147_s0, %s3280_s4  ;;  %s2945_s25 = sshll.u32 %s4860_s20, 4  ;;  %s5100_s25 = int_to_ptr.vmem [resolvable:$true] %s2945_s25 }
  0x1b   : > { %3417 = vmatpush3.bf16.msra.mxu0 %v3730_v1  ;;  %3683 = vmatpush3.bf16.msra.mxu1 %v3730_v1  ;;  %v3733_v4 = vld [vmem:[%s4013_s9] sm:$0xff]   ;;  %v3734_v7 = vld [vmem:[%s4013_s9 + $0x8] sm:$0xff]   ;;  %v3737_v9 = vld [vmem:[%s4013_s9 + $0x10] sm:$0xff]   ;;  %s5106_s28 = scalar_lea.sflag [#allocation3], %s161_s10  ;;  %s3861_s29 = scalar_lea.vmem %s5100_s25, 4096 }
  0x1c   : > { %3418 = vmatprep.subr.bf16.mxu0 %v3731_v2  ;;  %3680 = vmatprep.subr.bf16.mxu1 %v3731_v2  ;;  %v3735_v5 = vld [vmem:[%s4013_s9 + $0x200] sm:$0xff]   ;;  %v3736_v8 = vld [vmem:[%s4013_s9 + $0x208] sm:$0xff]   ;;  %v3739_v10 = vld [vmem:[%s4013_s9 + $0x210] sm:$0xff]   ;;  %p3862_p11 = scmp.ne.s32.totalorder %s5100_s25, %s3861_s29  ;;  %s3925_s30 = smov [#allocation2]  }
  0x1d   : > { %3422 = vmatprep.mubr.msk.bf16.mxu0 %vm1094_vm0, %v3733_v4  ;;  %3550 = vmatprep.mubr.msk.bf16.mxu1 %vm1094_vm0, %v3735_v5  ;;  %v3738_v11 = vld [vmem:[%s4013_s9 + $0x18] sm:$0xff]   ;;  %v3741_v13 = vld [vmem:[%s4013_s9 + $0x20] sm:$0xff]   ;;  %v3742_v15 = vld [vmem:[%s4013_s9 + $0x28] sm:$0xff]   ;;  %s3865_s4 = sshll.u32 %s3925_s30, 4  ;;  %s3866_s4 = int_to_ptr.vmem [resolvable:$false] %s3865_s4 }
  0x1e   : > { %v3740_v12 = vld [vmem:[%s4013_s9 + $0x218] sm:$0xff]   ;;  %v3743_v14 = vld [vmem:[%s4013_s9 + $0x220] sm:$0xff]   ;;  %v3744_v16 = vld [vmem:[%s4013_s9 + $0x228] sm:$0xff]   ;;  %p3863_p12 = pnand %p3862_p11, %p3986_p5  ;;  %s3867_s5 = scalar_lea.vmem %s3866_s4, 8192 }
  0x1f   : > { %3419 = vmatpush3.bf16.msra.mxu0 %v3731_v2  ;;  %3684 = vmatpush3.bf16.msra.mxu1 %v3731_v2  ;;  %v3745_v17 = vld [vmem:[%s4013_s9 + $0x30] sm:$0xff]   ;;  %v3746_v19 = vld [vmem:[%s4013_s9 + $0x38] sm:$0xff]   ;;  %v3749_v21 = vld [vmem:[%s4013_s9 + $0x40] sm:$0xff]   ;;  %p3868_p0 = scmp.lt.s32.totalorder %s5100_s25, %s3866_s4  ;;  %p3869_p1 = scmp.lt.s32.totalorder %s3867_s5, %s3861_s29 }
  0x20   : > { %3686 = vmatprep.subr.msk.bf16.mxu0 %vm1479_vm1, %v3732_v3  ;;  %3687 = vmatprep.subr.msk.bf16.mxu1 %vm1479_vm1, %v3732_v3  ;;  %v3747_v18 = vld [vmem:[%s4013_s9 + $0x230] sm:$0xff]   ;;  %v3748_v20 = vld [vmem:[%s4013_s9 + $0x238] sm:$0xff]   ;;  %v3751_v22 = vld [vmem:[%s4013_s9 + $0x240] sm:$0xff]   ;;  %p3864_p13 = pneg %p3863_p12 }
  0x21   : > { %v3750_v23 = vld [vmem:[%s4013_s9 + $0x48] sm:$0xff]   ;;  %v3753_v25 = vld [vmem:[%s4013_s9 + $0x50] sm:$0xff]   ;;  %v3754_v27 = vld [vmem:[%s4013_s9 + $0x58] sm:$0xff]   ;;  %p3870_p2 = por %p3869_p1, %p3868_p0 }
  0x22   : > { %v3752_v24 = vld [vmem:[%s4013_s9 + $0x248] sm:$0xff]   ;;  %v3755_v26 = vld [vmem:[%s4013_s9 + $0x250] sm:$0xff]   ;;  %v3756_v28 = vld [vmem:[%s4013_s9 + $0x258] sm:$0xff]  }
  0x23   : > { %3421 = vmatpush3.bf16.msra.mxu0 %v1481_v6  ;;  %3685 = vmatpush3.bf16.msra.mxu1 %v1481_v6  ;;  %v3757_v29 = vld [vmem:[%s4013_s9 + $0x60] sm:$0xff]   ;;  %v3758_v31 = vld [vmem:[%s4013_s9 + $0x68] sm:$0xff]   ;;  %v3761_v33 = vld [vmem:[%s4013_s9 + $0x70] sm:$0xff]   ;;  %p3871_p3 = pnand %p3870_p2, %p3864_p13 }
  0x24   : > { %v3759_v30 = vld [vmem:[%s4013_s9 + $0x260] sm:$0xff]   ;;  %v3760_v32 = vld [vmem:[%s4013_s9 + $0x268] sm:$0xff]   ;;  %v3763_v34 = vld [vmem:[%s4013_s9 + $0x270] sm:$0xff]  }
  0x25   : > { %v3762_v35 = vld [vmem:[%s4013_s9 + $0x78] sm:$0xff]   ;;  %v3765_v37 = vld [vmem:[%s4013_s9 + $0x80] sm:$0xff]   ;;  %v3766_v39 = vld [vmem:[%s4013_s9 + $0x88] sm:$0xff]  }
  0x26   : > { %3423 = vmatmul.mubr.msk.bf16.vlgmr.msra.gmra.mrb[0].mxu0 %vm1094_vm0, %v3734_v7  ;;  %3551 = vmatmul.mubr.msk.bf16.vlgmr.msra.gmra.mrb[0].mxu1 %vm1094_vm0, %v3736_v8  ;;  %v3764_v36 = vld [vmem:[%s4013_s9 + $0x278] sm:$0xff]   ;;  %v3767_v38 = vld [vmem:[%s4013_s9 + $0x280] sm:$0xff]   ;;  %v3768_v40 = vld [vmem:[%s4013_s9 + $0x288] sm:$0xff]  }
  0x27   : > { %3426 = vmatprep.mubr.msk.bf16.mxu0 %vm1094_vm0, %v3737_v9  ;;  %3554 = vmatprep.mubr.msk.bf16.mxu1 %vm1094_vm0, %v3739_v10  ;;  %v3769_v41 = vld [vmem:[%s4013_s9 + $0x90] sm:$0xff]   ;;  %v3770_v43 = vld [vmem:[%s4013_s9 + $0x98] sm:$0xff]   ;;  %v3773_v45 = vld [vmem:[%s4013_s9 + $0xa0] sm:$0xff]  }
  0x28   : > { %v3771_v42 = vld [vmem:[%s4013_s9 + $0x290] sm:$0xff]   ;;  %v3772_v44 = vld [vmem:[%s4013_s9 + $0x298] sm:$0xff]   ;;  %v3775_v46 = vld [vmem:[%s4013_s9 + $0x2a0] sm:$0xff]  }
  0x29   : > { %v3774_v47 = vld [vmem:[%s4013_s9 + $0xa8] sm:$0xff]   ;;  %v3777_v49 = vld [vmem:[%s4013_s9 + $0xb0] sm:$0xff]   ;;  %v3778_v51 = vld [vmem:[%s4013_s9 + $0xb8] sm:$0xff]  }
  0x2a   : > { %v3776_v48 = vld [vmem:[%s4013_s9 + $0x2a8] sm:$0xff]   ;;  %v3779_v50 = vld [vmem:[%s4013_s9 + $0x2b0] sm:$0xff]   ;;  %v3780_v52 = vld [vmem:[%s4013_s9 + $0x2b8] sm:$0xff]  }
  0x2b   : > { %v3781_v53 = vld [vmem:[%s4013_s9 + $0xc0] sm:$0xff]   ;;  %v3782_v55 = vld [vmem:[%s4013_s9 + $0xc8] sm:$0xff]   ;;  %v3785_v57 = vld [vmem:[%s4013_s9 + $0xd0] sm:$0xff]  }
  0x2c   : > { %v3783_v54 = vld [vmem:[%s4013_s9 + $0x2c0] sm:$0xff]   ;;  %v3784_v56 = vld [vmem:[%s4013_s9 + $0x2c8] sm:$0xff]   ;;  %v3787_v58 = vld [vmem:[%s4013_s9 + $0x2d0] sm:$0xff]  }
  0x2d   : > { %v3786_v59 = vld [vmem:[%s4013_s9 + $0xd8] sm:$0xff]   ;;  %v3789_v61 = vld [vmem:[%s4013_s9 + $0xe0] sm:$0xff]   ;;  %v3790_v63 = vld [vmem:[%s4013_s9 + $0xe8] sm:$0xff]  }
  0x2e   : > { %3427 = vmatmul.mubr.msk.bf16.gmra.mrb[4].mxu0 %vm1094_vm0, %v3738_v11  ;;  %3555 = vmatmul.mubr.msk.bf16.gmra.mrb[4].mxu1 %vm1094_vm0, %v3740_v12  ;;  %v3788_v60 = vld [vmem:[%s4013_s9 + $0x2d8] sm:$0xff]   ;;  %v3791_v62 = vld [vmem:[%s4013_s9 + $0x2e0] sm:$0xff]   ;;  %v3792_v0 = vld [vmem:[%s4013_s9 + $0x2e8] sm:$0xff]  }
  0x2f   : > { %3430 = vmatprep.mubr.msk.bf16.mxu0 %vm1094_vm0, %v3741_v13  ;;  %3558 = vmatprep.mubr.msk.bf16.mxu1 %vm1094_vm0, %v3743_v14  ;;  %v3793_v1 = vld [vmem:[%s4013_s9 + $0xf0] sm:$0xff]   ;;  %v3794_v3 = vld [vmem:[%s4013_s9 + $0xf8] sm:$0xff]   ;;  %v3797_v5 = vld [vmem:[%s4013_s9 + $0x100] sm:$0xff]  }
  0x30   : > { %v3795_v2 = vld [vmem:[%s4013_s9 + $0x2f0] sm:$0xff]   ;;  %v3796_v4 = vld [vmem:[%s4013_s9 + $0x2f8] sm:$0xff]   ;;  %v3799_v6 = vld [vmem:[%s4013_s9 + $0x300] sm:$0xff]  }
  0x31   : > { %v3798_v7 = vld [vmem:[%s4013_s9 + $0x108] sm:$0xff]   ;;  %v3801_v9 = vld [vmem:[%s4013_s9 + $0x110] sm:$0xff]   ;;  %v3802_v11 = vld [vmem:[%s4013_s9 + $0x118] sm:$0xff]  }
  0x32   : > { %v3800_v8 = vld [vmem:[%s4013_s9 + $0x308] sm:$0xff]   ;;  %v3803_v10 = vld [vmem:[%s4013_s9 + $0x310] sm:$0xff]   ;;  %v3804_v12 = vld [vmem:[%s4013_s9 + $0x318] sm:$0xff]  }
  0x33   : > { %v3805_v13 = vld [vmem:[%s4013_s9 + $0x120] sm:$0xff]  }
  0x34   : > { %v3807_v14 = vld [vmem:[%s4013_s9 + $0x320] sm:$0xff]  }
  0x36   : > { %3431 = vmatmul.mubr.msk.bf16.gmra.mrb[8].mxu0 %vm1094_vm0, %v3742_v15  ;;  %3559 = vmatmul.mubr.msk.bf16.gmra.mrb[8].mxu1 %vm1094_vm0, %v3744_v16  ;;  %v3806_v15 = vld [vmem:[%s4013_s9 + $0x128] sm:$0xff]  }
  0x37   : > { %3434 = vmatprep.mubr.msk.bf16.mxu0 %vm1094_vm0, %v3745_v17  ;;  %3562 = vmatprep.mubr.msk.bf16.mxu1 %vm1094_vm0, %v3747_v18  ;;  %v3808_v16 = vld [vmem:[%s4013_s9 + $0x328] sm:$0xff]   ;;  %v3809_v17 = vld [vmem:[%s4013_s9 + $0x130] sm:$0xff]  }
  0x38   : > { %v3811_v18 = vld [vmem:[%s4013_s9 + $0x330] sm:$0xff]  }
  0x3e   : > { %3435 = vmatmul.mubr.msk.bf16.gmra.mrb[12].mxu0 %vm1094_vm0, %v3746_v19  ;;  %3563 = vmatmul.mubr.msk.bf16.gmra.mrb[12].mxu1 %vm1094_vm0, %v3748_v20  ;;  %v3810_v19 = vld [vmem:[%s4013_s9 + $0x138] sm:$0xff]  }
  0x3f   : > { %3438 = vmatprep.mubr.msk.bf16.mxu0 %vm1094_vm0, %v3749_v21  ;;  %3566 = vmatprep.mubr.msk.bf16.mxu1 %vm1094_vm0, %v3751_v22  ;;  %v3812_v20 = vld [vmem:[%s4013_s9 + $0x338] sm:$0xff]   ;;  %v3813_v21 = vld [vmem:[%s4013_s9 + $0x140] sm:$0xff]  }
  0x40   : > { %v3815_v22 = vld [vmem:[%s4013_s9 + $0x340] sm:$0xff]  }
  0x46   : > { %3439 = vmatmul.mubr.msk.bf16.gmra.mrb[16].mxu0 %vm1094_vm0, %v3750_v23  ;;  %3567 = vmatmul.mubr.msk.bf16.gmra.mrb[16].mxu1 %vm1094_vm0, %v3752_v24  ;;  %v3814_v23 = vld [vmem:[%s4013_s9 + $0x148] sm:$0xff]  }
  0x47   : > { %3442 = vmatprep.mubr.msk.bf16.mxu0 %vm1094_vm0, %v3753_v25  ;;  %3570 = vmatprep.mubr.msk.bf16.mxu1 %vm1094_vm0, %v3755_v26  ;;  %v3816_v24 = vld [vmem:[%s4013_s9 + $0x348] sm:$0xff]   ;;  %v3817_v25 = vld [vmem:[%s4013_s9 + $0x150] sm:$0xff]  }
  0x48   : > { %v3819_v26 = vld [vmem:[%s4013_s9 + $0x350] sm:$0xff]  }
  0x4e   : > { %3443 = vmatmul.mubr.msk.bf16.gmra.mrb[20].mxu0 %vm1094_vm0, %v3754_v27  ;;  %3571 = vmatmul.mubr.msk.bf16.gmra.mrb[20].mxu1 %vm1094_vm0, %v3756_v28  ;;  %v3818_v27 = vld [vmem:[%s4013_s9 + $0x158] sm:$0xff]  }
  0x4f   : > { %3446 = vmatprep.mubr.msk.bf16.mxu0 %vm1094_vm0, %v3757_v29  ;;  %3574 = vmatprep.mubr.msk.bf16.mxu1 %vm1094_vm0, %v3759_v30  ;;  %v3820_v28 = vld [vmem:[%s4013_s9 + $0x358] sm:$0xff]   ;;  %v3821_v29 = vld [vmem:[%s4013_s9 + $0x160] sm:$0xff]  }
  0x50   : > { %v3823_v30 = vld [vmem:[%s4013_s9 + $0x360] sm:$0xff]  }
  0x56   : > { %3447 = vmatmul.mubr.msk.bf16.gmra.mrb[24].mxu0 %vm1094_vm0, %v3758_v31  ;;  %3575 = vmatmul.mubr.msk.bf16.gmra.mrb[24].mxu1 %vm1094_vm0, %v3760_v32  ;;  %v3822_v31 = vld [vmem:[%s4013_s9 + $0x168] sm:$0xff]  }
  0x57   : > { %3450 = vmatprep.mubr.msk.bf16.mxu0 %vm1094_vm0, %v3761_v33  ;;  %3578 = vmatprep.mubr.msk.bf16.mxu1 %vm1094_vm0, %v3763_v34  ;;  %v3824_v32 = vld [vmem:[%s4013_s9 + $0x368] sm:$0xff]   ;;  %v3825_v33 = vld [vmem:[%s4013_s9 + $0x170] sm:$0xff]  }
  0x58   : > { %v3827_v34 = vld [vmem:[%s4013_s9 + $0x370] sm:$0xff]  }
  0x5e   : > { %3451 = vmatmul.mubr.msk.bf16.gmra.mrb[28].mxu0 %vm1094_vm0, %v3762_v35  ;;  %3579 = vmatmul.mubr.msk.bf16.gmra.mrb[28].mxu1 %vm1094_vm0, %v3764_v36  ;;  %v3826_v35 = vld [vmem:[%s4013_s9 + $0x178] sm:$0xff]  }
  0x5f   : > { %3454 = vmatprep.mubr.msk.bf16.mxu0 %vm1094_vm0, %v3765_v37  ;;  %3582 = vmatprep.mubr.msk.bf16.mxu1 %vm1094_vm0, %v3767_v38  ;;  %v3828_v36 = vld [vmem:[%s4013_s9 + $0x378] sm:$0xff]   ;;  %v3829_v37 = vld [vmem:[%s4013_s9 + $0x180] sm:$0xff]  }
  0x60   : > { %v3831_v38 = vld [vmem:[%s4013_s9 + $0x380] sm:$0xff]  }
  0x66   : > { %3455 = vmatmul.mubr.msk.bf16.gmra.mrb[32].mxu0 %vm1094_vm0, %v3766_v39  ;;  %3583 = vmatmul.mubr.msk.bf16.gmra.mrb[32].mxu1 %vm1094_vm0, %v3768_v40  ;;  %v3830_v39 = vld [vmem:[%s4013_s9 + $0x188] sm:$0xff]  }
  0x67   : > { %3458 = vmatprep.mubr.msk.bf16.mxu0 %vm1094_vm0, %v3769_v41  ;;  %3586 = vmatprep.mubr.msk.bf16.mxu1 %vm1094_vm0, %v3771_v42  ;;  %v3832_v40 = vld [vmem:[%s4013_s9 + $0x388] sm:$0xff]   ;;  %v3833_v41 = vld [vmem:[%s4013_s9 + $0x190] sm:$0xff]  }
  0x68   : > { %v3835_v42 = vld [vmem:[%s4013_s9 + $0x390] sm:$0xff]  }
  0x6e   : > { %3459 = vmatmul.mubr.msk.bf16.gmra.mrb[36].mxu0 %vm1094_vm0, %v3770_v43  ;;  %3587 = vmatmul.mubr.msk.bf16.gmra.mrb[36].mxu1 %vm1094_vm0, %v3772_v44  ;;  %v3834_v43 = vld [vmem:[%s4013_s9 + $0x198] sm:$0xff]  }
  0x6f   : > { %3462 = vmatprep.mubr.msk.bf16.mxu0 %vm1094_vm0, %v3773_v45  ;;  %3590 = vmatprep.mubr.msk.bf16.mxu1 %vm1094_vm0, %v3775_v46  ;;  %v3836_v44 = vld [vmem:[%s4013_s9 + $0x398] sm:$0xff]   ;;  %v3837_v45 = vld [vmem:[%s4013_s9 + $0x1a0] sm:$0xff]  }
  0x70   : > { %v3839_v46 = vld [vmem:[%s4013_s9 + $0x3a0] sm:$0xff]  }
  0x76   : > { %3463 = vmatmul.mubr.msk.bf16.gmra.mrb[40].mxu0 %vm1094_vm0, %v3774_v47  ;;  %3591 = vmatmul.mubr.msk.bf16.gmra.mrb[40].mxu1 %vm1094_vm0, %v3776_v48  ;;  %v3838_v47 = vld [vmem:[%s4013_s9 + $0x1a8] sm:$0xff]  }
  0x77   : > { %3466 = vmatprep.mubr.msk.bf16.mxu0 %vm1094_vm0, %v3777_v49  ;;  %3594 = vmatprep.mubr.msk.bf16.mxu1 %vm1094_vm0, %v3779_v50  ;;  %v3840_v48 = vld [vmem:[%s4013_s9 + $0x3a8] sm:$0xff]   ;;  %v3841_v49 = vld [vmem:[%s4013_s9 + $0x1b0] sm:$0xff]  }
  0x78   : > { %v3843_v50 = vld [vmem:[%s4013_s9 + $0x3b0] sm:$0xff]  }
  0x7e   : > { %3467 = vmatmul.mubr.msk.bf16.gmra.mrb[44].mxu0 %vm1094_vm0, %v3778_v51  ;;  %3595 = vmatmul.mubr.msk.bf16.gmra.mrb[44].mxu1 %vm1094_vm0, %v3780_v52 }
  0x7f   : > { %3470 = vmatprep.mubr.msk.bf16.mxu0 %vm1094_vm0, %v3781_v53  ;;  %3598 = vmatprep.mubr.msk.bf16.mxu1 %vm1094_vm0, %v3783_v54  ;;  %v3842_v54 = vld [vmem:[%s4013_s9 + $0x1b8] sm:$0xff]  }
  0x86   : > { %3471 = vmatmul.mubr.msk.bf16.gmra.mrb[48].mxu0 %vm1094_vm0, %v3782_v55  ;;  %3599 = vmatmul.mubr.msk.bf16.gmra.mrb[48].mxu1 %vm1094_vm0, %v3784_v56  ;;  %v3844_v56 = vld [vmem:[%s4013_s9 + $0x3b8] sm:$0xff]  }
  0x87   : > { %3474 = vmatprep.mubr.msk.bf16.mxu0 %vm1094_vm0, %v3785_v57  ;;  %3602 = vmatprep.mubr.msk.bf16.mxu1 %vm1094_vm0, %v3787_v58 }
  0x8e   : > { %3475 = vmatmul.mubr.msk.bf16.gmra.mrb[52].mxu0 %vm1094_vm0, %v3786_v59  ;;  %3603 = vmatmul.mubr.msk.bf16.gmra.mrb[52].mxu1 %vm1094_vm0, %v3788_v60  ;;  %v3845_v59 = vld [vmem:[%s4013_s9 + $0x1c0] sm:$0xff]  }
  0x8f   : > { %3478 = vmatprep.mubr.msk.bf16.mxu0 %vm1094_vm0, %v3789_v61  ;;  %3606 = vmatprep.mubr.msk.bf16.mxu1 %vm1094_vm0, %v3791_v62  ;;  %v3847_v60 = vld [vmem:[%s4013_s9 + $0x3c0] sm:$0xff]  }
  0x96   : > { %3479 = vmatmul.mubr.msk.bf16.gmra.mrb[56].mxu0 %vm1094_vm0, %v3790_v63  ;;  %3607 = vmatmul.mubr.msk.bf16.gmra.mrb[56].mxu1 %vm1094_vm0, %v3792_v0 }
  0x97   : > { %3482 = vmatprep.mubr.msk.bf16.mxu0 %vm1094_vm0, %v3793_v1  ;;  %3610 = vmatprep.mubr.msk.bf16.mxu1 %vm1094_vm0, %v3795_v2  ;;  %v3846_v2 = vld [vmem:[%s4013_s9 + $0x1c8] sm:$0xff]  }
  0x9e   : > { %3483 = vmatmul.mubr.msk.bf16.gmra.mrb[60].mxu0 %vm1094_vm0, %v3794_v3  ;;  %3611 = vmatmul.mubr.msk.bf16.gmra.mrb[60].mxu1 %vm1094_vm0, %v3796_v4  ;;  %v3848_v4 = vld [vmem:[%s4013_s9 + $0x3c8] sm:$0xff]  }
  0x9f   : > { %3486 = vmatprep.mubr.msk.bf16.mxu0 %vm1094_vm0, %v3797_v5  ;;  %3614 = vmatprep.mubr.msk.bf16.mxu1 %vm1094_vm0, %v3799_v6 }
  0xa6   : > { %3487 = vmatmul.mubr.msk.bf16.gmra.mrb[64].mxu0 %vm1094_vm0, %v3798_v7  ;;  %3615 = vmatmul.mubr.msk.bf16.gmra.mrb[64].mxu1 %vm1094_vm0, %v3800_v8  ;;  %v3849_v7 = vld [vmem:[%s4013_s9 + $0x1d0] sm:$0xff]  }
  0xa7   : > { %3490 = vmatprep.mubr.msk.bf16.mxu0 %vm1094_vm0, %v3801_v9  ;;  %3618 = vmatprep.mubr.msk.bf16.mxu1 %vm1094_vm0, %v3803_v10  ;;  %v3851_v8 = vld [vmem:[%s4013_s9 + $0x3d0] sm:$0xff]  }
  0xae   : > { %3491 = vmatmul.mubr.msk.bf16.gmra.mrb[68].mxu0 %vm1094_vm0, %v3802_v11  ;;  %3619 = vmatmul.mubr.msk.bf16.gmra.mrb[68].mxu1 %vm1094_vm0, %v3804_v12 }
  0xaf   : > { %3494 = vmatprep.mubr.msk.bf16.mxu0 %vm1094_vm0, %v3805_v13  ;;  %3622 = vmatprep.mubr.msk.bf16.mxu1 %vm1094_vm0, %v3807_v14  ;;  %v3850_v14 = vld [vmem:[%s4013_s9 + $0x1d8] sm:$0xff]  }
  0xb6   : > { %3495 = vmatmul.mubr.msk.bf16.gmra.mrb[72].mxu0 %vm1094_vm0, %v3806_v15  ;;  %3623 = vmatmul.mubr.msk.bf16.gmra.mrb[72].mxu1 %vm1094_vm0, %v3808_v16  ;;  %v3852_v16 = vld [vmem:[%s4013_s9 + $0x3d8] sm:$0xff]  }
  0xb7   : > { %3498 = vmatprep.mubr.msk.bf16.mxu0 %vm1094_vm0, %v3809_v17  ;;  %3626 = vmatprep.mubr.msk.bf16.mxu1 %vm1094_vm0, %v3811_v18 }
  0xbe   : > { %3499 = vmatmul.mubr.msk.bf16.gmra.mrb[76].mxu0 %vm1094_vm0, %v3810_v19  ;;  %3627 = vmatmul.mubr.msk.bf16.gmra.mrb[76].mxu1 %vm1094_vm0, %v3812_v20  ;;  %v3853_v19 = vld [vmem:[%s4013_s9 + $0x1e0] sm:$0xff]  }
  0xbf   : > { %3502 = vmatprep.mubr.msk.bf16.mxu0 %vm1094_vm0, %v3813_v21  ;;  %3630 = vmatprep.mubr.msk.bf16.mxu1 %vm1094_vm0, %v3815_v22  ;;  %v3855_v20 = vld [vmem:[%s4013_s9 + $0x3e0] sm:$0xff]  }
  0xc6   : > { %3503 = vmatmul.mubr.msk.bf16.gmra.mrb[80].mxu0 %vm1094_vm0, %v3814_v23  ;;  %3631 = vmatmul.mubr.msk.bf16.gmra.mrb[80].mxu1 %vm1094_vm0, %v3816_v24 }
  0xc7   : > { %3506 = vmatprep.mubr.msk.bf16.mxu0 %vm1094_vm0, %v3817_v25  ;;  %3634 = vmatprep.mubr.msk.bf16.mxu1 %vm1094_vm0, %v3819_v26  ;;  %v3854_v26 = vld [vmem:[%s4013_s9 + $0x1e8] sm:$0xff]  }
  0xce   : > { %3507 = vmatmul.mubr.msk.bf16.gmra.mrb[84].mxu0 %vm1094_vm0, %v3818_v27  ;;  %3635 = vmatmul.mubr.msk.bf16.gmra.mrb[84].mxu1 %vm1094_vm0, %v3820_v28  ;;  %v3856_v28 = vld [vmem:[%s4013_s9 + $0x3e8] sm:$0xff]  }
  0xcf   : > { %3510 = vmatprep.mubr.msk.bf16.mxu0 %vm1094_vm0, %v3821_v29  ;;  %3638 = vmatprep.mubr.msk.bf16.mxu1 %vm1094_vm0, %v3823_v30 }
  0xd6   : > { %3511 = vmatmul.mubr.msk.bf16.gmra.mrb[88].mxu0 %vm1094_vm0, %v3822_v31  ;;  %3639 = vmatmul.mubr.msk.bf16.gmra.mrb[88].mxu1 %vm1094_vm0, %v3824_v32  ;;  %v3857_v31 = vld [vmem:[%s4013_s9 + $0x1f0] sm:$0xff]  }
  0xd7   : > { %3514 = vmatprep.mubr.msk.bf16.mxu0 %vm1094_vm0, %v3825_v33  ;;  %3642 = vmatprep.mubr.msk.bf16.mxu1 %vm1094_vm0, %v3827_v34  ;;  %v3859_v32 = vld [vmem:[%s4013_s9 + $0x3f0] sm:$0xff]  }
  0xde   : > { %3515 = vmatmul.mubr.msk.bf16.gmra.mrb[92].mxu0 %vm1094_vm0, %v3826_v35  ;;  %3643 = vmatmul.mubr.msk.bf16.gmra.mrb[92].mxu1 %vm1094_vm0, %v3828_v36 }
  0xdf   : > { %3518 = vmatprep.mubr.msk.bf16.mxu0 %vm1094_vm0, %v3829_v37  ;;  %3646 = vmatprep.mubr.msk.bf16.mxu1 %vm1094_vm0, %v3831_v38  ;;  %v3858_v38 = vld [vmem:[%s4013_s9 + $0x1f8] sm:$0xff]  }
  0xe6   : > { %3519 = vmatmul.mubr.msk.bf16.gmra.mrb[96].mxu0 %vm1094_vm0, %v3830_v39  ;;  %3647 = vmatmul.mubr.msk.bf16.gmra.mrb[96].mxu1 %vm1094_vm0, %v3832_v40  ;;  %v3860_v40 = vld [vmem:[%s4013_s9 + $0x3f8] sm:$0xff]  }
  0xe7   : > { %3522 = vmatprep.mubr.msk.bf16.mxu0 %vm1094_vm0, %v3833_v41  ;;  %3650 = vmatprep.mubr.msk.bf16.mxu1 %vm1094_vm0, %v3835_v42 }
  0xee   : > { %3523 = vmatmul.mubr.msk.bf16.gmra.mrb[100].mxu0 %vm1094_vm0, %v3834_v43  ;;  %3651 = vmatmul.mubr.msk.bf16.gmra.mrb[100].mxu1 %vm1094_vm0, %v3836_v44 }
  0xef   : > { %3526 = vmatprep.mubr.msk.bf16.mxu0 %vm1094_vm0, %v3837_v45  ;;  %3654 = vmatprep.mubr.msk.bf16.mxu1 %vm1094_vm0, %v3839_v46 }
  0xf6   : > { %3527 = vmatmul.mubr.msk.bf16.gmra.mrb[104].mxu0 %vm1094_vm0, %v3838_v47  ;;  %3655 = vmatmul.mubr.msk.bf16.gmra.mrb[104].mxu1 %vm1094_vm0, %v3840_v48 }
  0xf7   : > { %3530 = vmatprep.mubr.msk.bf16.mxu0 %vm1094_vm0, %v3841_v49  ;;  %3658 = vmatprep.mubr.msk.bf16.mxu1 %vm1094_vm0, %v3843_v50 }
  0xf9   : > { %v4235_v51 = vpop.f32.mrb[0].mxu0  ;;  %v4237_v52 = vpop.f32.mrb[0].mxu1 }
  0xfa   : > { %5165 = vst [vmem:[#allocation5_spill] sm:$0xff] %v4237_v52  ;;  %v4239_v53 = vpop.f32.mrb[1].mxu0  ;;  %v4242_v55 = vpop.f32.mrb[1].mxu1 }
  0xfb   : > { %5166 = vst [vmem:[#allocation6_spill] sm:$0xff] %v4242_v55  ;;  %v4245_v57 = vpop.f32.mrb[2].mxu0  ;;  %v4247_v58 = vpop.f32.mrb[2].mxu1 }
  0xfc   : > { %5167 = vst [vmem:[#allocation7_spill] sm:$0xff] %v4247_v58  ;;  %v4251_v61 = vpop.f32.mrb[3].mxu0  ;;  %v4253_v62 = vpop.f32.mrb[3].mxu1 }
  0xfd   : > { %5168 = vst [vmem:[#allocation8_spill] sm:$0xff] %v4253_v62 }
  0xfe   : > { %3531 = vmatmul.mubr.msk.bf16.gmra.mrb[108].mxu0 %vm1094_vm0, %v3842_v54  ;;  %3659 = vmatmul.mubr.msk.bf16.gmra.mrb[108].mxu1 %vm1094_vm0, %v3844_v56 }
  0xff   : > { %3534 = vmatprep.mubr.msk.bf16.mxu0 %vm1094_vm0, %v3845_v59  ;;  %3662 = vmatprep.mubr.msk.bf16.mxu1 %vm1094_vm0, %v3847_v60 }
 0x101   : > { %v4259_v63 = vpop.f32.mrb[4].mxu0  ;;  %v4261_v0 = vpop.f32.mrb[4].mxu1 }
 0x102   : > { %5169 = vst [vmem:[#allocation9_spill] sm:$0xff] %v4261_v0  ;;  %v4263_v1 = vpop.f32.mrb[5].mxu0  ;;  %v4266_v3 = vpop.f32.mrb[5].mxu1 }
 0x103   : > { %5170 = vst [vmem:[#allocation10_spill] sm:$0xff] %v4266_v3  ;;  %v4269_v5 = vpop.f32.mrb[6].mxu0  ;;  %v4271_v6 = vpop.f32.mrb[6].mxu1 }
 0x104   : > { %5171 = vst [vmem:[#allocation11_spill] sm:$0xff] %v4271_v6  ;;  %v4275_v9 = vpop.f32.mrb[7].mxu0  ;;  %v4277_v10 = vpop.f32.mrb[7].mxu1 }
 0x105   : > { %5172 = vst [vmem:[#allocation12_spill] sm:$0xff] %v4277_v10 }
 0x106   : > { %3535 = vmatmul.mubr.msk.bf16.gmra.mrb[112].mxu0 %vm1094_vm0, %v3846_v2  ;;  %3663 = vmatmul.mubr.msk.bf16.gmra.mrb[112].mxu1 %vm1094_vm0, %v3848_v4 }
 0x107   : > { %3538 = vmatprep.mubr.msk.bf16.mxu0 %vm1094_vm0, %v3849_v7  ;;  %3666 = vmatprep.mubr.msk.bf16.mxu1 %vm1094_vm0, %v3851_v8 }
 0x109   : > { %v4283_v11 = vpop.f32.mrb[8].mxu0  ;;  %v4285_v12 = vpop.f32.mrb[8].mxu1 }
 0x10a   : > { %5173 = vst [vmem:[#allocation13_spill] sm:$0xff] %v4285_v12  ;;  %v4287_v13 = vpop.f32.mrb[9].mxu0  ;;  %v4290_v15 = vpop.f32.mrb[9].mxu1 }
 0x10b   : > { %5174 = vst [vmem:[#allocation14_spill] sm:$0xff] %v4290_v15  ;;  %v4293_v17 = vpop.f32.mrb[10].mxu0  ;;  %v4295_v18 = vpop.f32.mrb[10].mxu1 }
 0x10c   : > { %5175 = vst [vmem:[#allocation15_spill] sm:$0xff] %v4295_v18  ;;  %v4299_v21 = vpop.f32.mrb[11].mxu0  ;;  %v4301_v22 = vpop.f32.mrb[11].mxu1 }
 0x10d   : > { %5176 = vst [vmem:[#allocation16_spill] sm:$0xff] %v4301_v22 }
 0x10e   : > { %3539 = vmatmul.mubr.msk.bf16.gmra.mrb[116].mxu0 %vm1094_vm0, %v3850_v14  ;;  %3667 = vmatmul.mubr.msk.bf16.gmra.mrb[116].mxu1 %vm1094_vm0, %v3852_v16 }
 0x10f   : > { %3542 = vmatprep.mubr.msk.bf16.mxu0 %vm1094_vm0, %v3853_v19  ;;  %3670 = vmatprep.mubr.msk.bf16.mxu1 %vm1094_vm0, %v3855_v20 }
 0x111   : > { %v4307_v23 = vpop.f32.mrb[12].mxu0  ;;  %v4309_v24 = vpop.f32.mrb[12].mxu1 }
 0x112   : > { %5177 = vst [vmem:[#allocation17_spill] sm:$0xff] %v4309_v24  ;;  %v4311_v25 = vpop.f32.mrb[13].mxu0  ;;  %v4314_v27 = vpop.f32.mrb[13].mxu1 }
 0x113   : > { %5178 = vst [vmem:[#allocation18_spill] sm:$0xff] %v4314_v27  ;;  %v4317_v29 = vpop.f32.mrb[14].mxu0  ;;  %v4319_v30 = vpop.f32.mrb[14].mxu1 }
 0x114   : > { %5179 = vst [vmem:[#allocation19_spill] sm:$0xff] %v4319_v30  ;;  %v4323_v33 = vpop.f32.mrb[15].mxu0  ;;  %v4325_v34 = vpop.f32.mrb[15].mxu1 }
 0x115   : > { %5180 = vst [vmem:[#allocation20_spill] sm:$0xff] %v4325_v34 }
 0x116   : > { %3543 = vmatmul.mubr.msk.bf16.gmra.mrb[120].mxu0 %vm1094_vm0, %v3854_v26  ;;  %3671 = vmatmul.mubr.msk.bf16.gmra.mrb[120].mxu1 %vm1094_vm0, %v3856_v28 }
 0x117   : > { %3546 = vmatprep.mubr.msk.bf16.mxu0 %vm1094_vm0, %v3857_v31  ;;  %3674 = vmatprep.mubr.msk.bf16.mxu1 %vm1094_vm0, %v3859_v32 }
 0x119   : > { %v4331_v35 = vpop.f32.mrb[16].mxu0  ;;  %v4333_v36 = vpop.f32.mrb[16].mxu1 }
 0x11a   : > { %5181 = vst [vmem:[#allocation21_spill] sm:$0xff] %v4333_v36  ;;  %v4335_v37 = vpop.f32.mrb[17].mxu0  ;;  %v4338_v39 = vpop.f32.mrb[17].mxu1 }
 0x11b   : > { %5182 = vst [vmem:[#allocation22_spill] sm:$0xff] %v4338_v39  ;;  %v4341_v41 = vpop.f32.mrb[18].mxu0  ;;  %v4343_v42 = vpop.f32.mrb[18].mxu1 }
 0x11c   : > { %5183 = vst [vmem:[#allocation23_spill] sm:$0xff] %v4343_v42  ;;  %v4345_v43 = vpop.f32.mrb[19].mxu0  ;;  %v4347_v44 = vpop.f32.mrb[19].mxu1 }
 0x11d   : > { %5184 = vst [vmem:[#allocation24_spill] sm:$0xff] %v4347_v44 }
 0x11e   : > { %3547 = vmatmul.mubr.msk.bf16.gmra.mrb[124].mxu0 %vm1094_vm0, %v3858_v38  ;;  %3675 = vmatmul.mubr.msk.bf16.gmra.mrb[124].mxu1 %vm1094_vm0, %v3860_v40 }
 0x121   : > { %v4351_v45 = vpop.f32.mrb[20].mxu0  ;;  %v4353_v46 = vpop.f32.mrb[20].mxu1 }
 0x122   : > { %5185 = vst [vmem:[#allocation25_spill] sm:$0xff] %v4353_v46  ;;  %v4355_v47 = vpop.f32.mrb[21].mxu0  ;;  %v4357_v48 = vpop.f32.mrb[21].mxu1 }
 0x123   : > { %5186 = vst [vmem:[#allocation26_spill] sm:$0xff] %v4357_v48  ;;  %v4359_v49 = vpop.f32.mrb[22].mxu0  ;;  %v4361_v50 = vpop.f32.mrb[22].mxu1 }
 0x124   : > { %5187 = vst [vmem:[#allocation27_spill] sm:$0xff] %v4361_v50  ;;  %v4363_v54 = vpop.f32.mrb[23].mxu0  ;;  %v4365_v56 = vpop.f32.mrb[23].mxu1 }
 0x125   : > { %5188 = vst [vmem:[#allocation28_spill] sm:$0xff] %v4365_v56 }
 0x129   : > { %v4367_v59 = vpop.f32.mrb[24].mxu0  ;;  %v4369_v60 = vpop.f32.mrb[24].mxu1 }
 0x12a   : > { %5189 = vst [vmem:[#allocation29_spill] sm:$0xff] %v4369_v60  ;;  %v4371_v2 = vpop.f32.mrb[25].mxu0  ;;  %v4373_v4 = vpop.f32.mrb[25].mxu1 }
 0x12b   : > { %5190 = vst [vmem:[#allocation30_spill] sm:$0xff] %v4373_v4  ;;  %v4375_v7 = vpop.f32.mrb[26].mxu0  ;;  %v4377_v8 = vpop.f32.mrb[26].mxu1 }
 0x12c   : > { %5191 = vst [vmem:[#allocation31_spill] sm:$0xff] %v4377_v8  ;;  %v4379_v14 = vpop.f32.mrb[27].mxu0  ;;  %v4381_v16 = vpop.f32.mrb[27].mxu1 }
 0x12d   : > { %5192 = vst [vmem:[#allocation32_spill] sm:$0xff] %v4381_v16 }
 0x131   : > { %v4383_v19 = vpop.f32.mrb[28].mxu0  ;;  %v4385_v20 = vpop.f32.mrb[28].mxu1 }
 0x132   : > { %5193 = vst [vmem:[#allocation33_spill] sm:$0xff] %v4383_v19  ;;  %5194 = vst [vmem:[#allocation34_spill] sm:$0xff] %v4385_v20  ;;  %v4387_v26 = vpop.f32.mrb[29].mxu0  ;;  %v4389_v28 = vpop.f32.mrb[29].mxu1 }
 0x133   : > { %5195 = vst [vmem:[#allocation35_spill] sm:$0xff] %v4389_v28  ;;  %v4391_v31 = vpop.f32.mrb[30].mxu0  ;;  %v4393_v32 = vpop.f32.mrb[30].mxu1 }
 0x134   : > { %5196 = vst [vmem:[#allocation36_spill] sm:$0xff] %v4391_v31  ;;  %5197 = vst [vmem:[#allocation37_spill] sm:$0xff] %v4393_v32  ;;  %v4395_v38 = vpop.f32.mrb[31].mxu0  ;;  %v4397_v40 = vpop.f32.mrb[31].mxu1 }
 0x135   : > { %5198 = vst [vmem:[#allocation38_spill] sm:$0xff] %v4397_v40 }
 0x139   : > { %v4399_v8 = vpop.f32.mrb[32].mxu0  ;;  %v4401_v4 = vpop.f32.mrb[32].mxu1 }
 0x13a   : > { %5199 = vst [vmem:[#allocation39_spill] sm:$0xff] %v4401_v4  ;;  %v4405_v20 = vpop.f32.mrb[33].mxu0  ;;  %v4407_v60 = vpop.f32.mrb[33].mxu1  ;;  %v5242_v40 = vmax.f32 %v4235_v51, %v4399_v8 }
 0x13b   : > { %5200 = vst [vmem:[#allocation40_spill] sm:$0xff] %v4407_v60  ;;  %v4411_v56 = vpop.f32.mrb[34].mxu0  ;;  %v4413_v32 = vpop.f32.mrb[34].mxu1  ;;  %v5243_v16 = vmax.f32 %v4239_v53, %v4405_v20 }
 0x13c   : > { %5201 = vst [vmem:[#allocation41_spill] sm:$0xff] %v4413_v32  ;;  %v4417_v50 = vpop.f32.mrb[35].mxu0  ;;  %v4419_v48 = vpop.f32.mrb[35].mxu1  ;;  %v5244_v28 = vmax.f32 %v4245_v57, %v4411_v56 }
 0x13d   : > { %5202 = vst [vmem:[#allocation42_spill] sm:$0xff] %v4419_v48 }
 0x141   : > { %v4423_v46 = vpop.f32.mrb[36].mxu0  ;;  %v4425_v44 = vpop.f32.mrb[36].mxu1 }
 0x142   : > { %5203 = vst [vmem:[#allocation43_spill] sm:$0xff] %v4425_v44  ;;  %v4429_v42 = vpop.f32.mrb[37].mxu0  ;;  %v4431_v39 = vpop.f32.mrb[37].mxu1 }
 0x143   : > { %5204 = vst [vmem:[#allocation44_spill] sm:$0xff] %v4431_v39  ;;  %v4435_v36 = vpop.f32.mrb[38].mxu0  ;;  %v4437_v34 = vpop.f32.mrb[38].mxu1 }
 0x144   : > { %5205 = vst [vmem:[#allocation45_spill] sm:$0xff] %v4437_v34  ;;  %v4441_v30 = vpop.f32.mrb[39].mxu0  ;;  %v4443_v27 = vpop.f32.mrb[39].mxu1 }
 0x145   : > { %5206 = vst [vmem:[#allocation46_spill] sm:$0xff] %v4443_v27 }
 0x149   : > { %v4447_v24 = vpop.f32.mrb[40].mxu0  ;;  %v4449_v22 = vpop.f32.mrb[40].mxu1 }
 0x14a   : > { %5207 = vst [vmem:[#allocation47_spill] sm:$0xff] %v4449_v22  ;;  %v4453_v18 = vpop.f32.mrb[41].mxu0  ;;  %v4455_v15 = vpop.f32.mrb[41].mxu1 }
 0x14b   : > { %5208 = vst [vmem:[#allocation48_spill] sm:$0xff] %v4455_v15  ;;  %v4459_v12 = vpop.f32.mrb[42].mxu0  ;;  %v4461_v27 = vpop.f32.mrb[42].mxu1 }
 0x14c   : > { %5209 = vst [vmem:[#allocation49_spill] sm:$0xff] %v4461_v27  ;;  %v4465_v34 = vpop.f32.mrb[43].mxu0  ;;  %v4467_v22 = vpop.f32.mrb[43].mxu1 }
 0x14d   : > { %5210 = vst [vmem:[#allocation50_spill] sm:$0xff] %v4467_v22 }
 0x151   : > { %v4471_v39 = vpop.f32.mrb[44].mxu0  ;;  %v4473_v15 = vpop.f32.mrb[44].mxu1 }
 0x152   : > { %5211 = vst [vmem:[#allocation51_spill] sm:$0xff] %v4473_v15  ;;  %v4477_v44 = vpop.f32.mrb[45].mxu0  ;;  %v4479_v27 = vpop.f32.mrb[45].mxu1 }
 0x153   : > { %5212 = vst [vmem:[#allocation52_spill] sm:$0xff] %v4479_v27  ;;  %v4483_v10 = vpop.f32.mrb[46].mxu0  ;;  %v4485_v22 = vpop.f32.mrb[46].mxu1 }
 0x154   : > { %5213 = vst [vmem:[#allocation53_spill] sm:$0xff] %v4485_v22  ;;  %v4489_v6 = vpop.f32.mrb[47].mxu0  ;;  %v4491_v15 = vpop.f32.mrb[47].mxu1 }
 0x155   : > { %5214 = vst [vmem:[#allocation54_spill] sm:$0xff] %v4491_v15 }
 0x159   : > { %v4495_v3 = vpop.f32.mrb[48].mxu0  ;;  %v4497_v27 = vpop.f32.mrb[48].mxu1 }
 0x15a   : > { %5215 = vst [vmem:[#allocation55_spill] sm:$0xff] %v4497_v27  ;;  %v4501_v0 = vpop.f32.mrb[49].mxu0  ;;  %v4503_v22 = vpop.f32.mrb[49].mxu1 }
 0x15b   : > { %5216 = vst [vmem:[#allocation56_spill] sm:$0xff] %v4503_v22  ;;  %v4507_v48 = vpop.f32.mrb[50].mxu0  ;;  %v4509_v15 = vpop.f32.mrb[50].mxu1 }
 0x15c   : > { %5217 = vst [vmem:[#allocation57_spill] sm:$0xff] %v4509_v15  ;;  %v4513_v32 = vpop.f32.mrb[51].mxu0  ;;  %v4515_v27 = vpop.f32.mrb[51].mxu1 }
 0x15d   : > { %5218 = vst [vmem:[#allocation58_spill] sm:$0xff] %v4515_v27 }
 0x161   : > { %v4519_v60 = vpop.f32.mrb[52].mxu0  ;;  %v4521_v22 = vpop.f32.mrb[52].mxu1 }
 0x162   : > { %5219 = vst [vmem:[#allocation59_spill] sm:$0xff] %v4521_v22  ;;  %v4525_v62 = vpop.f32.mrb[53].mxu0  ;;  %v4527_v15 = vpop.f32.mrb[53].mxu1 }
 0x163   : > { %5220 = vst [vmem:[#allocation60_spill] sm:$0xff] %v4527_v15  ;;  %v4531_v4 = vpop.f32.mrb[54].mxu0  ;;  %v4533_v27 = vpop.f32.mrb[54].mxu1 }
 0x164   : > { %5221 = vst [vmem:[#allocation61_spill] sm:$0xff] %v4531_v4  ;;  %5222 = vst [vmem:[#allocation62_spill] sm:$0xff] %v4533_v27  ;;  %v4537_v58 = vpop.f32.mrb[55].mxu0  ;;  %v4539_v22 = vpop.f32.mrb[55].mxu1 }
 0x165   : > { %5223 = vst [vmem:[#allocation63_spill] sm:$0xff] %v4537_v58  ;;  %5224 = vst [vmem:[#allocation64_spill] sm:$0xff] %v4539_v22 }
 0x169   : > { %v4543_v55 = vpop.f32.mrb[56].mxu0  ;;  %v4545_v15 = vpop.f32.mrb[56].mxu1 }
 0x16a   : > { %5225 = vst [vmem:[#allocation65_spill] sm:$0xff] %v4543_v55  ;;  %5226 = vst [vmem:[#allocation66_spill] sm:$0xff] %v4545_v15  ;;  %v4549_v52 = vpop.f32.mrb[57].mxu0  ;;  %v4551_v27 = vpop.f32.mrb[57].mxu1 }
 0x16b   : > { %5227 = vst [vmem:[#allocation67_spill] sm:$0xff] %v4549_v52  ;;  %5228 = vst [vmem:[#allocation68_spill] sm:$0xff] %v4551_v27  ;;  %v4555_v4 = vpop.f32.mrb[58].mxu0  ;;  %v4557_v22 = vpop.f32.mrb[58].mxu1 }
 0x16c   : > { %5229 = vst [vmem:[#allocation69_spill] sm:$0xff] %v4555_v4  ;;  %5230 = vst [vmem:[#allocation70_spill] sm:$0xff] %v4557_v22  ;;  %v4561_v58 = vpop.f32.mrb[59].mxu0  ;;  %v4563_v15 = vpop.f32.mrb[59].mxu1 }
 0x16d   : > { %5231 = vst [vmem:[#allocation71_spill] sm:$0xff] %v4561_v58  ;;  %5232 = vst [vmem:[#allocation72_spill] sm:$0xff] %v4563_v15 }
 0x171   : > { %v4567_v55 = vpop.f32.mrb[60].mxu0  ;;  %v4569_v27 = vpop.f32.mrb[60].mxu1 }
 0x172   : > { %5233 = vst [vmem:[#allocation73_spill] sm:$0xff] %v4567_v55  ;;  %5234 = vst [vmem:[#allocation74_spill] sm:$0xff] %v4569_v27  ;;  %v4573_v52 = vpop.f32.mrb[61].mxu0  ;;  %v4575_v22 = vpop.f32.mrb[61].mxu1 }
 0x173   : > { %5235 = vst [vmem:[#allocation75_spill] sm:$0xff] %v4573_v52  ;;  %5236 = vst [vmem:[#allocation76_spill] sm:$0xff] %v4575_v22  ;;  %v4579_v4 = vpop.f32.mrb[62].mxu0  ;;  %v4581_v15 = vpop.f32.mrb[62].mxu1 }
 0x174   : > { %5237 = vst [vmem:[#allocation77_spill] sm:$0xff] %v4579_v4  ;;  %5238 = vst [vmem:[#allocation78_spill] sm:$0xff] %v4581_v15  ;;  %v4585_v58 = vpop.f32.mrb[63].mxu0  ;;  %v4587_v27 = vpop.f32.mrb[63].mxu1 }
 0x175   : > { %5239 = vst [vmem:[#allocation79_spill] sm:$0xff] %v4585_v58  ;;  %5240 = vst [vmem:[#allocation80_spill] sm:$0xff] %v4587_v27 }
 0x179   : > { %v3488_v55 = vpop.f32.mrb[64].mxu0  ;;  %v4591_v19 = vpop.f32.mrb[64].mxu1 }
 0x17a   : > { %5241 = vst [vmem:[#allocation81_spill] sm:$0xff] %v4591_v19  ;;  %v4596_v22 = vmax.f32 %v5242_v40, %v3488_v55  ;;  %v1773_v52 = vpop.f32.mrb[65].mxu0  ;;  %v4598_v15 = vpop.f32.mrb[65].mxu1  ;;  %v5245_v55 = vmax.f32 %v4251_v61, %v4417_v50 }
 0x17b   : > { %v4603_v4 = vmax.f32 %v5243_v16, %v1773_v52  ;;  %v3489_v27 = vpop.f32.mrb[66].mxu0  ;;  %v4605_v31 = vpop.f32.mrb[66].mxu1  ;;  %v5246_v52 = vmax.f32 %v4259_v63, %v4423_v46  ;;  %v5249_v46 = vmax.f32 %v4275_v9, %v4441_v30  ;;  %v5252_v30 = vmax.f32 %v4293_v17, %v4459_v12 }
 0x17c   : > { %v4610_v19 = vmax.f32 %v5244_v28, %v3489_v27  ;;  %v1776_v58 = vpop.f32.mrb[67].mxu0  ;;  %v4612_v51 = vpop.f32.mrb[67].mxu1  ;;  %v5247_v27 = vmax.f32 %v4263_v1, %v4429_v42  ;;  %v5250_v42 = vmax.f32 %v4283_v11, %v4447_v24  ;;  %v5253_v24 = vmax.f32 %v4299_v21, %v4465_v34 }
 0x17d   : > { %v4617_v8 = vmax.f32 %v5245_v55, %v1776_v58  ;;  %v5248_v58 = vmax.f32 %v4269_v5, %v4435_v36  ;;  %v5251_v36 = vmax.f32 %v4287_v13, %v4453_v18  ;;  %v5254_v18 = vmax.f32 %v4307_v23, %v4471_v39 }
 0x17e   : > { %v5255_v17 = vmax.f32 %v4311_v25, %v4477_v44  ;;  %v5256_v34 = vmax.f32 %v4317_v29, %v4483_v10  ;;  %v5257_v39 = vmax.f32 %v4323_v33, %v4489_v6  ;;  %v5258_v44 = vmax.f32 %v4331_v35, %v4495_v3 }
 0x17f   : > { %v5259_v29 = vmax.f32 %v4335_v37, %v4501_v0  ;;  %v5260_v33 = vmax.f32 %v4341_v41, %v4507_v48  ;;  %v5261_v35 = vmax.f32 %v4345_v43, %v4513_v32  ;;  %v5263_v37 = vmax.f32 %v4351_v45, %v4519_v60  ;;  %v5267_v32 = vld [vmem:[#allocation61_spill] sm:$0xff]  ;;  %v5270_v60 = vld [vmem:[#allocation63_spill] sm:$0xff] }
 0x180   : > { %v5265_v48 = vmax.f32 %v4355_v47, %v4525_v62  ;;  %v5273_v47 = vld [vmem:[#allocation65_spill] sm:$0xff] }
 0x181   : > { %v3492_v40 = vpop.f32.mrb[68].mxu0  ;;  %v4619_v53 = vpop.f32.mrb[68].mxu1 }
 0x182   : > { %v4624_v16 = vmax.f32 %v5246_v52, %v3492_v40  ;;  %v1789_v20 = vpop.f32.mrb[69].mxu0  ;;  %v4626_v57 = vpop.f32.mrb[69].mxu1 }
 0x183   : > { %v4631_v56 = vmax.f32 %v5247_v27, %v1789_v20  ;;  %v3493_v28 = vpop.f32.mrb[70].mxu0  ;;  %v4633_v61 = vpop.f32.mrb[70].mxu1 }
 0x184   : > { %v4638_v50 = vmax.f32 %v5248_v58, %v3493_v28  ;;  %v1792_v55 = vpop.f32.mrb[71].mxu0  ;;  %v4640_v63 = vpop.f32.mrb[71].mxu1 }
 0x185   : > { %v4645_v40 = vmax.f32 %v5249_v46, %v1792_v55 }
 0x189   : > { %v3496_v52 = vpop.f32.mrb[72].mxu0  ;;  %v4647_v1 = vpop.f32.mrb[72].mxu1 }
 0x18a   : > { %v4652_v20 = vmax.f32 %v5250_v42, %v3496_v52  ;;  %v1805_v27 = vpop.f32.mrb[73].mxu0  ;;  %v4654_v5 = vpop.f32.mrb[73].mxu1 }
 0x18b   : > { %v4659_v28 = vmax.f32 %v5251_v36, %v1805_v27  ;;  %v3497_v58 = vpop.f32.mrb[74].mxu0  ;;  %v4661_v9 = vpop.f32.mrb[74].mxu1 }
 0x18c   : > { %v4666_v55 = vmax.f32 %v5252_v30, %v3497_v58  ;;  %v1808_v46 = vpop.f32.mrb[75].mxu0  ;;  %v4668_v11 = vpop.f32.mrb[75].mxu1 }
 0x18d   : > { %v4673_v52 = vmax.f32 %v5253_v24, %v1808_v46 }
 0x191   : > { %v3500_v42 = vpop.f32.mrb[76].mxu0  ;;  %v4675_v13 = vpop.f32.mrb[76].mxu1 }
 0x192   : > { %v4680_v27 = vmax.f32 %v5254_v18, %v3500_v42  ;;  %v1821_v36 = vpop.f32.mrb[77].mxu0  ;;  %v4682_v12 = vpop.f32.mrb[77].mxu1 }
 0x193   : > { %v4687_v58 = vmax.f32 %v5255_v17, %v1821_v36  ;;  %v3501_v30 = vpop.f32.mrb[78].mxu0  ;;  %v4689_v21 = vpop.f32.mrb[78].mxu1 }
 0x194   : > { %v4694_v46 = vmax.f32 %v5256_v34, %v3501_v30  ;;  %v1824_v24 = vpop.f32.mrb[79].mxu0  ;;  %v4696_v23 = vpop.f32.mrb[79].mxu1 }
 0x195   : > { %v4701_v42 = vmax.f32 %v5257_v39, %v1824_v24 }
 0x199   : > { %v3504_v18 = vpop.f32.mrb[80].mxu0  ;;  %v4703_v25 = vpop.f32.mrb[80].mxu1 }
 0x19a   : > { %v4708_v36 = vmax.f32 %v5258_v44, %v3504_v18  ;;  %v1837_v17 = vpop.f32.mrb[81].mxu0  ;;  %v4710_v10 = vpop.f32.mrb[81].mxu1 }
 0x19b   : > { %v4715_v30 = vmax.f32 %v5259_v29, %v1837_v17  ;;  %v3505_v34 = vpop.f32.mrb[82].mxu0  ;;  %v4717_v6 = vpop.f32.mrb[82].mxu1 }
 0x19c   : > { %v4722_v24 = vmax.f32 %v5260_v33, %v3505_v34  ;;  %v1840_v39 = vpop.f32.mrb[83].mxu0  ;;  %v4724_v3 = vpop.f32.mrb[83].mxu1 }
 0x19d   : > { %v4729_v18 = vmax.f32 %v5261_v35, %v1840_v39  ;;  %v5268_v39 = vmax.f32 %v4359_v49, %v5267_v32 }
 0x1a1   : > { %v3508_v44 = vpop.f32.mrb[84].mxu0  ;;  %v4731_v0 = vpop.f32.mrb[84].mxu1 }
 0x1a2   : > { %5262 = vst [vmem:[#allocation82_spill] sm:$0xff] %v4731_v0  ;;  %v4736_v17 = vmax.f32 %v5263_v37, %v3508_v44  ;;  %v1853_v29 = vpop.f32.mrb[85].mxu0  ;;  %v4738_v41 = vpop.f32.mrb[85].mxu1  ;;  %v5271_v44 = vmax.f32 %v4363_v54, %v5270_v60 }
 0x1a3   : > { %5264 = vst [vmem:[#allocation83_spill] sm:$0xff] %v4738_v41  ;;  %v4743_v34 = vmax.f32 %v5265_v48, %v1853_v29  ;;  %v3509_v33 = vpop.f32.mrb[86].mxu0  ;;  %v4745_v43 = vpop.f32.mrb[86].mxu1  ;;  %v5274_v29 = vmax.f32 %v4367_v59, %v5273_v47 }
 0x1a4   : > { %5266 = vst [vmem:[#allocation84_spill] sm:$0xff] %v4745_v43  ;;  %v4750_v35 = vmax.f32 %v5268_v39, %v3509_v33  ;;  %v1856_v0 = vpop.f32.mrb[87].mxu0  ;;  %v4752_v45 = vpop.f32.mrb[87].mxu1  ;;  %v5277_v33 = vld [vmem:[#allocation67_spill] sm:$0xff] }
 0x1a5   : > { %5269 = vst [vmem:[#allocation61_spill] sm:$0xff] %v4752_v45  ;;  %v4757_v37 = vmax.f32 %v5271_v44, %v1856_v0  ;;  %v5278_v32 = vmax.f32 %v4371_v2, %v5277_v33  ;;  %v5281_v0 = vld [vmem:[#allocation69_spill] sm:$0xff] }
 0x1a6   : > { %v5282_v60 = vmax.f32 %v4375_v7, %v5281_v0  ;;  %v5290_v33 = vld [vmem:[#allocation73_spill] sm:$0xff] }
 0x1a9   : > { %v3512_v41 = vpop.f32.mrb[88].mxu0  ;;  %v4759_v62 = vpop.f32.mrb[88].mxu1 }
 0x1aa   : > { %5272 = vst [vmem:[#allocation63_spill] sm:$0xff] %v4759_v62  ;;  %v4764_v48 = vmax.f32 %v5274_v29, %v3512_v41  ;;  %v1869_v43 = vpop.f32.mrb[89].mxu0  ;;  %v4766_v49 = vpop.f32.mrb[89].mxu1  ;;  %v5285_v41 = vld [vmem:[#allocation71_spill] sm:$0xff] }
 0x1ab   : > { %5276 = vst [vmem:[#allocation85_spill] sm:$0xff] %v4766_v49  ;;  %v4771_v39 = vmax.f32 %v5278_v32, %v1869_v43  ;;  %v3513_v45 = vpop.f32.mrb[90].mxu0  ;;  %v4773_v54 = vpop.f32.mrb[90].mxu1  ;;  %v5286_v47 = vmax.f32 %v4379_v14, %v5285_v41  ;;  %v5289_v43 = vld [vmem:[#allocation33_spill] sm:$0xff] }
 0x1ac   : > { %5275 = vst [vmem:[#allocation65_spill] sm:$0xff] %v4764_v48  ;;  %5280 = vst [vmem:[#allocation86_spill] sm:$0xff] %v4773_v54  ;;  %v4778_v44 = vmax.f32 %v5282_v60, %v3513_v45  ;;  %v1872_v62 = vpop.f32.mrb[91].mxu0  ;;  %v4780_v59 = vpop.f32.mrb[91].mxu1  ;;  %v5291_v32 = vmax.f32 %v5289_v43, %v5290_v33  ;;  %v5294_v45 = vld [vmem:[#allocation75_spill] sm:$0xff]  ;;  %v5299_v41 = vld [vmem:[#allocation77_spill] sm:$0xff] }
 0x1ad   : > { %5279 = vst [vmem:[#allocation67_spill] sm:$0xff] %v4771_v39  ;;  %5284 = vst [vmem:[#allocation87_spill] sm:$0xff] %v4780_v59  ;;  %v4785_v29 = vmax.f32 %v5286_v47, %v1872_v62  ;;  %v5295_v0 = vmax.f32 %v4387_v26, %v5294_v45  ;;  %v5298_v62 = vld [vmem:[#allocation36_spill] sm:$0xff]  ;;  %v5312_v48 = vld [vmem:[#allocation81_spill] sm:$0xff] }
 0x1ae   : > { %5283 = vst [vmem:[#allocation69_spill] sm:$0xff] %v4778_v44  ;;  %v5300_v47 = vmax.f32 %v5298_v62, %v5299_v41  ;;  %v5306_v41 = vld [vmem:[#allocation5_spill] sm:$0xff] }
 0x1af   : > { %5287 = vst [vmem:[#allocation71_spill] sm:$0xff] %v4785_v29 }
 0x1b1   : > { %v3516_v49 = vpop.f32.mrb[92].mxu0  ;;  %v4787_v2 = vpop.f32.mrb[92].mxu1 }
 0x1b2   : > { %5288 = vst [vmem:[#allocation88_spill] sm:$0xff] %v4787_v2  ;;  %v4792_v54 = vmax.f32 %v5291_v32, %v3516_v49  ;;  %v1885_v39 = vpop.f32.mrb[93].mxu0  ;;  %v4794_v7 = vpop.f32.mrb[93].mxu1  ;;  %v5303_v49 = vld [vmem:[#allocation79_spill] sm:$0xff] }
 0x1b3   : > { %5293 = vst [vmem:[#allocation73_spill] sm:$0xff] %v4794_v7  ;;  %v4799_v60 = vmax.f32 %v5295_v0, %v1885_v39  ;;  %v3517_v59 = vpop.f32.mrb[94].mxu0  ;;  %v4801_v14 = vpop.f32.mrb[94].mxu1  ;;  %v5304_v33 = vmax.f32 %v4395_v38, %v5303_v49  ;;  %v5307_v38 = vld [vmem:[#allocation6_spill] sm:$0xff] }
 0x1b4   : > { %5292 = vst [vmem:[#allocation33_spill] sm:$0xff] %v4792_v54  ;;  %5297 = vst [vmem:[#allocation89_spill] sm:$0xff] %v4801_v14  ;;  %v4806_v2 = vmax.f32 %v5300_v47, %v3517_v59  ;;  %v1888_v29 = vpop.f32.mrb[95].mxu0  ;;  %v4808_v43 = vpop.f32.mrb[95].mxu1  ;;  %v5310_v54 = vld [vmem:[#allocation8_spill] sm:$0xff] }
 0x1b5   : > { %5296 = vst [vmem:[#allocation75_spill] sm:$0xff] %v4799_v60  ;;  %5302 = vst [vmem:[#allocation77_spill] sm:$0xff] %v4808_v43  ;;  %v4813_v32 = vmax.f32 %v5304_v33, %v1888_v29  ;;  %v5308_v33 = vld [vmem:[#allocation7_spill] sm:$0xff] }
 0x1b6   : > { %5301 = vst [vmem:[#allocation36_spill] sm:$0xff] %v4806_v2 }
 0x1b7   : > { %5305 = vst [vmem:[#allocation79_spill] sm:$0xff] %v4813_v32 }
 0x1b9   : > { %v3520_v7 = vpop.f32.mrb[96].mxu0  ;;  %v3648_v26 = vpop.f32.mrb[96].mxu1 }
 0x1ba   : > { %v2606_v39 = vmax.f32 %v4596_v22, %v3520_v7  ;;  %v1901_v45 = vpop.f32.mrb[97].mxu0  ;;  %v2413_v0 = vpop.f32.mrb[97].mxu1  ;;  %v5309_v22 = vld [vmem:[#allocation39_spill] sm:$0xff] }
 0x1bb   : > { %v2604_v14 = vmax.f32 %v4603_v4, %v1901_v45  ;;  %v3521_v62 = vpop.f32.mrb[98].mxu0  ;;  %v3649_v59 = vpop.f32.mrb[98].mxu1  ;;  %v5311_v4 = vld [vmem:[#allocation40_spill] sm:$0xff] }
 0x1bc   : > { %v2638_v47 = vmax.f32 %v2606_v39, %v5306_v41  ;;  %v2607_v43 = vmax.f32 %v4610_v19, %v3521_v62  ;;  %v1904_v2 = vpop.f32.mrb[99].mxu0  ;;  %v2416_v60 = vpop.f32.mrb[99].mxu1  ;;  %v5313_v41 = vld [vmem:[#allocation41_spill] sm:$0xff] }
 0x1bd   : > { %v2636_v29 = vmax.f32 %v2604_v14, %v5307_v38  ;;  %v2605_v49 = vmax.f32 %v4617_v8, %v1904_v2  ;;  %v4831_v14 = vld [vmem:[%s5149_s2] ss:$0 sm:$0xff] }
 0x1be   : > { %v2639_v32 = vmax.f32 %v2607_v43, %v5308_v33  ;;  %v2670_v7 = vmax.f32 %v2638_v47, %v5309_v22  ;;  %v5314_v43 = vld [vmem:[#allocation42_spill] sm:$0xff] }
 0x1bf   : > { %v2637_v44 = vmax.f32 %v2605_v49, %v5310_v54  ;;  %v2668_v45 = vmax.f32 %v2636_v29, %v5311_v4  ;;  %v5315_v4 = vld [vmem:[#allocation9_spill] sm:$0xff] }
 0x1c0   : > { %v2702_v39 = vmax.f32 %v2670_v7, %v5312_v48  ;;  %v2671_v19 = vmax.f32 %v2639_v32, %v5313_v41 }
 0x1c1   : > { %v2700_v8 = vmax.f32 %v2668_v45, %v4598_v15  ;;  %v3524_v2 = vpop.f32.mrb[100].mxu0  ;;  %v2669_v62 = vmax.f32 %v2637_v44, %v5314_v43  ;;  %v4835_v47 = vpop.f32.mrb[100].mxu1  ;;  %v5317_v43 = vld [vmem:[#allocation11_spill] sm:$0xff] }
 0x1c2   : > { %v2734_v54 = vmax.f32 %v2702_v39, %v3648_v26  ;;  %v2703_v38 = vmax.f32 %v2671_v19, %v4605_v31  ;;  %v2610_v29 = vmax.f32 %v4624_v16, %v3524_v2  ;;  %v1917_v48 = vpop.f32.mrb[101].mxu0  ;;  %v4839_v49 = vpop.f32.mrb[101].mxu1  ;;  %v5316_v19 = vld [vmem:[#allocation10_spill] sm:$0xff] }
 0x1c3   : > { %v2732_v32 = vmax.f32 %v2700_v8, %v2413_v0  ;;  %v2701_v33 = vmax.f32 %v2669_v62, %v4612_v51  ;;  %v2608_v15 = vmax.f32 %v4631_v56, %v1917_v48  ;;  %v3525_v22 = vpop.f32.mrb[102].mxu0  ;;  %v4845_v7 = vpop.f32.mrb[102].mxu1 }
 0x1c4   : > { %v2773_v44 = vadd.f32 %v4831_v14, %v2734_v54  ;;  %v2735_v26 = vmax.f32 %v2703_v38, %v3649_v59  ;;  %v2642_v31 = vmax.f32 %v2610_v29, %v5315_v4  ;;  %v2611_v16 = vmax.f32 %v4638_v50, %v3525_v22  ;;  %v1920_v45 = vpop.f32.mrb[103].mxu0  ;;  %v4850_v39 = vpop.f32.mrb[103].mxu1  ;;  %v5318_v54 = vld [vmem:[#allocation12_spill] sm:$0xff] }
 0x1c5   : > { %v2771_v41 = vadd.f32 %v4831_v14, %v2732_v32  ;;  %v2733_v0 = vmax.f32 %v2701_v33, %v2416_v60  ;;  %v2640_v51 = vmax.f32 %v2608_v15, %v5316_v19  ;;  %v2609_v56 = vmax.f32 %v4645_v40, %v1920_v45  ;;  %v5319_v60 = vld [vmem:[#allocation43_spill] sm:$0xff]  ;;  %v5320_v15 = vld [vmem:[#allocation44_spill] sm:$0xff]  ;;  %v5321_v45 = vld [vmem:[#allocation45_spill] sm:$0xff] }
 0x1c6   : > { %vm2805_vm2 = vcmp.ge.f32.partialorder %v2773_v44, 0.0  ;;  %v2837_v8 = vmul.f32 0.01, %v2773_v44  ;;  %v2774_v2 = vadd.f32 %v4831_v14, %v2735_v26  ;;  %v2643_v59 = vmax.f32 %v2611_v16, %v5317_v43  ;;  %v5322_v43 = vld [vmem:[#allocation46_spill] sm:$0xff] }
 0x1c7   : > { %vm2803_vm3 = vcmp.ge.f32.partialorder %v2771_v41, 0.0  ;;  %v2835_v62 = vmul.f32 0.01, %v2771_v41  ;;  %v2772_v50 = vadd.f32 %v4831_v14, %v2733_v0  ;;  %v2641_v38 = vmax.f32 %v2609_v56, %v5318_v54 }
 0x1c8   : > { %v2869_v29 = vsel %vm2805_vm2, %v2773_v44, %v2837_v8  ;;  %vm2806_vm4 = vcmp.ge.f32.partialorder %v2774_v2, 0.0  ;;  %v2838_v48 = vmul.f32 0.01, %v2774_v2  ;;  %v2674_v32 = vmax.f32 %v2642_v31, %v5319_v60 }
 0x1c9   : > { %2901 = vst [vmem:[%s4860_s20 + $0x10] sm:$0xff] %v2869_v29  ;;  %v2867_v40 = vsel %vm2803_vm3, %v2771_v41, %v2835_v62  ;;  %vm2804_vm5 = vcmp.ge.f32.partialorder %v2772_v50, 0.0  ;;  %v2836_v33 = vmul.f32 0.01, %v2772_v50  ;;  %v2672_v22 = vmax.f32 %v2640_v51, %v5320_v15  ;;  %v3528_v26 = vpop.f32.mrb[104].mxu0  ;;  %v3656_v4 = vpop.f32.mrb[104].mxu1 }
 0x1ca   : > { %2899 = vst [vmem:[%s4860_s20] sm:$0xff] %v2867_v40  ;;  %v2870_v44 = vsel %vm2806_vm4, %v2774_v2, %v2838_v48  ;;  %v2706_v16 = vmax.f32 %v2674_v32, %v4619_v53  ;;  %v2675_v31 = vmax.f32 %v2643_v59, %v5321_v45  ;;  %v2614_v0 = vmax.f32 %v4652_v20, %v3528_v26  ;;  %v1933_v19 = vpop.f32.mrb[105].mxu0  ;;  %v2445_v56 = vpop.f32.mrb[105].mxu1  ;;  %v5323_v59 = vld [vmem:[#allocation13_spill] sm:$0xff]  ;;  %v5328_v45 = vld [vmem:[#allocation48_spill] sm:$0xff] }
 0x1cb   : > { %2902 = vst [vmem:[%s4860_s20 + $0x18] sm:$0xff] %v2870_v44  ;;  %v2868_v8 = vsel %vm2804_vm5, %v2772_v50, %v2836_v33  ;;  %v2704_v41 = vmax.f32 %v2672_v22, %v4626_v57  ;;  %v2673_v62 = vmax.f32 %v2641_v38, %v5322_v43  ;;  %v2612_v51 = vmax.f32 %v4659_v28, %v1933_v19  ;;  %v3529_v54 = vpop.f32.mrb[106].mxu0  ;;  %v4872_v29 = vpop.f32.mrb[106].mxu1  ;;  %v5324_v28 = vld [vmem:[#allocation14_spill] sm:$0xff]  ;;  %v5326_v22 = vld [vmem:[#allocation47_spill] sm:$0xff] }
 0x1cc   : > { %2900 = vst [vmem:[%s4860_s20 + $0x8] sm:$0xff] %v2868_v8  ;;  %v2738_v53 = vmax.f32 %v2706_v16, %v4835_v47  ;;  %v2707_v2 = vmax.f32 %v2675_v31, %v4633_v61  ;;  %v2646_v20 = vmax.f32 %v2614_v0, %v5323_v59  ;;  %v2615_v48 = vmax.f32 %v4666_v55, %v3529_v54  ;;  %v1936_v60 = vpop.f32.mrb[107].mxu0  ;;  %v4879_v50 = vpop.f32.mrb[107].mxu1  ;;  %v5325_v61 = vld [vmem:[#allocation15_spill] sm:$0xff]  ;;  %v5327_v16 = vld [vmem:[#allocation16_spill] sm:$0xff] }
 0x1cd   : > { %v2736_v57 = vmax.f32 %v2704_v41, %v4839_v49  ;;  %v2705_v38 = vmax.f32 %v2673_v62, %v4640_v63  ;;  %v2644_v32 = vmax.f32 %v2612_v51, %v5324_v28  ;;  %v2613_v40 = vmax.f32 %v4673_v52, %v1936_v60 }
 0x1ce   : > { %v2777_v33 = vadd.f32 %v4831_v14, %v2738_v53  ;;  %v2739_v47 = vmax.f32 %v2707_v2, %v4845_v7  ;;  %v2647_v15 = vmax.f32 %v2615_v48, %v5325_v61  ;;  %v2678_v26 = vmax.f32 %v2646_v20, %v5326_v22 }
 0x1cf   : > { %v2775_v55 = vadd.f32 %v4831_v14, %v2736_v57  ;;  %v2737_v44 = vmax.f32 %v2705_v38, %v4850_v39  ;;  %v2645_v49 = vmax.f32 %v2613_v40, %v5327_v16  ;;  %v2676_v63 = vmax.f32 %v2644_v32, %v5328_v45  ;;  %v5329_v57 = vld [vmem:[#allocation49_spill] sm:$0xff]  ;;  %v5332_v16 = vld [vmem:[#allocation18_spill] sm:$0xff] }
 0x1d0   : > { %vm2809_vm6 = vcmp.ge.f32.partialorder %v2777_v33, 0.0  ;;  %v2841_v31 = vmul.f32 0.01, %v2777_v33  ;;  %v2778_v52 = vadd.f32 %v4831_v14, %v2739_v47  ;;  %v2710_v0 = vmax.f32 %v2678_v26, %v4647_v1  ;;  %v5330_v47 = vld [vmem:[#allocation50_spill] sm:$0xff] }
 0x1d1   : > { %vm2807_vm7 = vcmp.ge.f32.partialorder %v2775_v55, 0.0  ;;  %v2839_v7 = vmul.f32 0.01, %v2775_v55  ;;  %v2776_v19 = vadd.f32 %v4831_v14, %v2737_v44  ;;  %v2708_v8 = vmax.f32 %v2676_v63, %v4654_v5  ;;  %v3532_v41 = vpop.f32.mrb[108].mxu0  ;;  %v4897_v39 = vpop.f32.mrb[108].mxu1 }
 0x1d2   : > { %v2873_v43 = vsel %vm2809_vm6, %v2777_v33, %v2841_v31  ;;  %vm2810_vm8 = vcmp.ge.f32.partialorder %v2778_v52, 0.0  ;;  %v2842_v62 = vmul.f32 0.01, %v2778_v52  ;;  %v2742_v51 = vmax.f32 %v2710_v0, %v3656_v4  ;;  %v1949_v54 = vpop.f32.mrb[109].mxu0  ;;  %v4899_v53 = vpop.f32.mrb[109].mxu1  ;;  %v5333_v0 = vld [vmem:[#allocation51_spill] sm:$0xff] }
 0x1d3   : > { %2905 = vst [vmem:[%s4860_s20 + $0x30] sm:$0xff] %v2873_v43  ;;  %v2871_v1 = vsel %vm2807_vm7, %v2775_v55, %v2839_v7  ;;  %vm2808_vm9 = vcmp.ge.f32.partialorder %v2776_v19, 0.0  ;;  %v2840_v2 = vmul.f32 0.01, %v2776_v19  ;;  %v2740_v59 = vmax.f32 %v2708_v8, %v2445_v56  ;;  %v3533_v20 = vpop.f32.mrb[110].mxu0  ;;  %v4902_v5 = vpop.f32.mrb[110].mxu1 }
 0x1d4   : > { %2903 = vst [vmem:[%s4860_s20 + $0x20] sm:$0xff] %v2871_v1  ;;  %v2874_v48 = vsel %vm2810_vm8, %v2778_v52, %v2842_v62  ;;  %v2781_v60 = vadd.f32 %v4831_v14, %v2742_v51  ;;  %v2679_v38 = vmax.f32 %v2647_v15, %v5329_v57  ;;  %v2618_v4 = vmax.f32 %v4680_v27, %v3532_v41  ;;  %v1952_v28 = vpop.f32.mrb[111].mxu0  ;;  %v4908_v32 = vpop.f32.mrb[111].mxu1  ;;  %v5331_v15 = vld [vmem:[#allocation17_spill] sm:$0xff]  ;;  %v5335_v62 = vld [vmem:[#allocation19_spill] sm:$0xff]  ;;  %v5336_v51 = vld [vmem:[#allocation20_spill] sm:$0xff] }
 0x1d5   : > { %2906 = vst [vmem:[%s4860_s20 + $0x38] sm:$0xff] %v2874_v48  ;;  %v2872_v40 = vsel %vm2808_vm9, %v2776_v19, %v2840_v2  ;;  %v2779_v33 = vadd.f32 %v4831_v14, %v2740_v59  ;;  %v2677_v56 = vmax.f32 %v2645_v49, %v5330_v47  ;;  %v2616_v61 = vmax.f32 %v4687_v58, %v1949_v54  ;;  %v5334_v19 = vld [vmem:[#allocation52_spill] sm:$0xff] }
 0x1d6   : > { %2904 = vst [vmem:[%s4860_s20 + $0x28] sm:$0xff] %v2872_v40  ;;  %vm2813_vm10 = vcmp.ge.f32.partialorder %v2781_v60, 0.0  ;;  %v2845_v22 = vmul.f32 0.01, %v2781_v60  ;;  %v2711_v26 = vmax.f32 %v2679_v38, %v4661_v9  ;;  %v2650_v55 = vmax.f32 %v2618_v4, %v5331_v15  ;;  %v5337_v38 = vld [vmem:[#allocation53_spill] sm:$0xff] }
 0x1d7   : > { %vm2811_vm11 = vcmp.ge.f32.partialorder %v2779_v33, 0.0  ;;  %v2843_v27 = vmul.f32 0.01, %v2779_v33  ;;  %v2709_v44 = vmax.f32 %v2677_v56, %v4668_v11  ;;  %v2648_v45 = vmax.f32 %v2616_v61, %v5332_v16  ;;  %v5339_v61 = vld [vmem:[#allocation54_spill] sm:$0xff] }
 0x1d8   : > { %v2877_v63 = vsel %vm2813_vm10, %v2781_v60, %v2845_v22  ;;  %v2743_v31 = vmax.f32 %v2711_v26, %v4872_v29  ;;  %v2619_v49 = vmax.f32 %v4694_v46, %v3533_v20  ;;  %v2617_v58 = vmax.f32 %v4701_v42, %v1952_v28  ;;  %v5340_v26 = vld [vmem:[#allocation22_spill] sm:$0xff] }
 0x1d9   : > { %2909 = vst [vmem:[%s4860_s20 + $0x50] sm:$0xff] %v2877_v63  ;;  %v2875_v52 = vsel %vm2811_vm11, %v2779_v33, %v2843_v27  ;;  %v2741_v9 = vmax.f32 %v2709_v44, %v4879_v50  ;;  %v2682_v7 = vmax.f32 %v2650_v55, %v5333_v0  ;;  %v2680_v8 = vmax.f32 %v2648_v45, %v5334_v19  ;;  %v3536_v41 = vpop.f32.mrb[112].mxu0  ;;  %v4926_v43 = vpop.f32.mrb[112].mxu1  ;;  %v5343_v0 = vld [vmem:[#allocation24_spill] sm:$0xff] }
 0x1da   : > { %2907 = vst [vmem:[%s4860_s20 + $0x40] sm:$0xff] %v2875_v52  ;;  %v2782_v11 = vadd.f32 %v4831_v14, %v2743_v31  ;;  %v2651_v29 = vmax.f32 %v2619_v49, %v5335_v62  ;;  %v2649_v46 = vmax.f32 %v2617_v58, %v5336_v51  ;;  %v2622_v42 = vmax.f32 %v4708_v36, %v3536_v41  ;;  %v1965_v54 = vpop.f32.mrb[113].mxu0  ;;  %v4933_v1 = vpop.f32.mrb[113].mxu1  ;;  %v5338_v36 = vld [vmem:[#allocation21_spill] sm:$0xff]  ;;  %v5344_v41 = vld [vmem:[#allocation56_spill] sm:$0xff] }
 0x1db   : > { %v2780_v50 = vadd.f32 %v4831_v14, %v2741_v9  ;;  %v2714_v2 = vmax.f32 %v2682_v7, %v4675_v13  ;;  %v2712_v59 = vmax.f32 %v2680_v8, %v4682_v12  ;;  %v2620_v20 = vmax.f32 %v4715_v30, %v1965_v54  ;;  %v3537_v48 = vpop.f32.mrb[114].mxu0  ;;  %v4939_v60 = vpop.f32.mrb[114].mxu1 }
 0x1dc   : > { %vm2814_vm12 = vcmp.ge.f32.partialorder %v2782_v11, 0.0  ;;  %v2846_v57 = vmul.f32 0.01, %v2782_v11  ;;  %v2683_v4 = vmax.f32 %v2651_v29, %v5337_v38  ;;  %v2654_v28 = vmax.f32 %v2622_v42, %v5338_v36  ;;  %v1968_v40 = vpop.f32.mrb[115].mxu0  ;;  %v4943_v33 = vpop.f32.mrb[115].mxu1 }
 0x1dd   : > { %vm2812_vm13 = vcmp.ge.f32.partialorder %v2780_v50, 0.0  ;;  %v2844_v13 = vmul.f32 0.01, %v2780_v50  ;;  %v2746_v12 = vmax.f32 %v2714_v2, %v4897_v39  ;;  %v2744_v30 = vmax.f32 %v2712_v59, %v4899_v53 }
 0x1de   : > { %v2878_v47 = vsel %vm2814_vm12, %v2782_v11, %v2846_v57  ;;  %v2715_v56 = vmax.f32 %v2683_v4, %v4689_v21  ;;  %v2681_v22 = vmax.f32 %v2649_v46, %v5339_v61  ;;  %v2652_v15 = vmax.f32 %v2620_v20, %v5340_v26  ;;  %v5341_v21 = vld [vmem:[#allocation55_spill] sm:$0xff]  ;;  %v5345_v46 = vld [vmem:[#allocation57_spill] sm:$0xff]  ;;  %v5346_v20 = vld [vmem:[#allocation58_spill] sm:$0xff] }
 0x1df   : > { %2910 = vst [vmem:[%s4860_s20 + $0x58] sm:$0xff] %v2878_v47  ;;  %v2876_v55 = vsel %vm2812_vm13, %v2780_v50, %v2844_v13  ;;  %v2785_v27 = vadd.f32 %v4831_v14, %v2746_v12  ;;  %v2783_v44 = vadd.f32 %v4831_v14, %v2744_v30  ;;  %v2623_v16 = vmax.f32 %v4722_v24, %v3537_v48  ;;  %v5342_v24 = vld [vmem:[#allocation23_spill] sm:$0xff]  ;;  %v5347_v13 = vld [vmem:[#allocation25_spill] sm:$0xff] }
 0x1e0   : > { %2908 = vst [vmem:[%s4860_s20 + $0x48] sm:$0xff] %v2876_v55  ;;  %v2747_v39 = vmax.f32 %v2715_v56, %v4902_v5  ;;  %v2713_v53 = vmax.f32 %v2681_v22, %v4696_v23  ;;  %v2621_v45 = vmax.f32 %v4729_v18, %v1968_v40  ;;  %v2686_v63 = vmax.f32 %v2654_v28, %v5341_v21 }
 0x1e1   : > { %vm2817_vm14 = vcmp.ge.f32.partialorder %v2785_v27, 0.0  ;;  %v2849_v31 = vmul.f32 0.01, %v2785_v27  ;;  %vm2815_vm15 = vcmp.ge.f32.partialorder %v2783_v44, 0.0  ;;  %v2847_v49 = vmul.f32 0.01, %v2783_v44 }
 0x1e2   : > { %v2786_v58 = vadd.f32 %v4831_v14, %v2747_v39  ;;  %v2745_v52 = vmax.f32 %v2713_v53, %v4908_v32  ;;  %v2655_v9 = vmax.f32 %v2623_v16, %v5342_v24  ;;  %v2653_v5 = vmax.f32 %v2621_v45, %v5343_v0  ;;  %v3540_v7 = vpop.f32.mrb[116].mxu0  ;;  %v4963_v23 = vpop.f32.mrb[116].mxu1  ;;  %v5352_v0 = vld [vmem:[#allocation60_spill] sm:$0xff] }
 0x1e3   : > { %v2881_v18 = vsel %vm2817_vm14, %v2785_v27, %v2849_v31  ;;  %v2879_v19 = vsel %vm2815_vm15, %v2783_v44, %v2847_v49  ;;  %v2718_v8 = vmax.f32 %v2686_v63, %v4703_v25  ;;  %v2684_v11 = vmax.f32 %v2652_v15, %v5344_v41  ;;  %v1981_v62 = vpop.f32.mrb[117].mxu0  ;;  %v4967_v29 = vpop.f32.mrb[117].mxu1  ;;  %v5348_v15 = vld [vmem:[#allocation26_spill] sm:$0xff]  ;;  %v5350_v63 = vld [vmem:[#allocation28_spill] sm:$0xff]  ;;  %v5351_v49 = vld [vmem:[#allocation59_spill] sm:$0xff] }
 0x1e4   : > { %2913 = vst [vmem:[%s4860_s20 + $0x70] sm:$0xff] %v2881_v18  ;;  %2911 = vst [vmem:[%s4860_s20 + $0x60] sm:$0xff] %v2879_v19  ;;  %vm2818_vm0 = vcmp.ge.f32.partialorder %v2786_v58, 0.0  ;;  %v2850_v32 = vmul.f32 0.01, %v2786_v58  ;;  %v2784_v51 = vadd.f32 %v4831_v14, %v2745_v52  ;;  %v2687_v42 = vmax.f32 %v2655_v9, %v5345_v46  ;;  %v3541_v54 = vpop.f32.mrb[118].mxu0 }
 0x1e5   : > { %v4973_v50 = vpop.f32.mrb[118].mxu1  ;;  %v2750_v2 = vmax.f32 %v2718_v8, %v4926_v43  ;;  %v2716_v25 = vmax.f32 %v2684_v11, %v4710_v10  ;;  %v2626_v59 = vmax.f32 %v4736_v17, %v3540_v7  ;;  %v2685_v48 = vmax.f32 %v2653_v5, %v5346_v20  ;;  %v1984_v57 = vpop.f32.mrb[119].mxu0  ;;  %v5353_v18 = vld [vmem:[#allocation82_spill] sm:$0xff]  ;;  %v5355_v11 = vld [vmem:[#allocation65_spill] sm:$0xff]  ;;  %v5359_v20 = vld [vmem:[#allocation84_spill] sm:$0xff] }
 0x1e6   : > { %v4979_v38 = vpop.f32.mrb[119].mxu1  ;;  %v2882_v4 = vsel %vm2818_vm0, %v2786_v58, %v2850_v32  ;;  %vm2816_vm1 = vcmp.ge.f32.partialorder %v2784_v51, 0.0  ;;  %v2848_v36 = vmul.f32 0.01, %v2784_v51  ;;  %v2719_v28 = vmax.f32 %v2687_v42, %v4717_v6  ;;  %v5354_v8 = vld [vmem:[#allocation62_spill] sm:$0xff]  ;;  %v5357_v42 = vld [vmem:[#allocation64_spill] sm:$0xff] }
 0x1e7   : > { %2914 = vst [vmem:[%s4860_s20 + $0x78] sm:$0xff] %v2882_v4  ;;  %v2789_v40 = vadd.f32 %v4831_v14, %v2750_v2  ;;  %v2748_v43 = vmax.f32 %v2716_v25, %v4933_v1  ;;  %v2658_v10 = vmax.f32 %v2626_v59, %v5347_v13  ;;  %v2717_v17 = vmax.f32 %v2685_v48, %v4724_v3  ;;  %v5358_v2 = vld [vmem:[#allocation67_spill] sm:$0xff] }
 0x1e8   : > { %v2880_v12 = vsel %vm2816_vm1, %v2784_v51, %v2848_v36  ;;  %v2751_v30 = vmax.f32 %v2719_v28, %v4939_v60  ;;  %v2624_v47 = vmax.f32 %v4743_v34, %v1981_v62  ;;  %v2627_v56 = vmax.f32 %v4750_v35, %v3541_v54  ;;  %v5349_v60 = vld [vmem:[#allocation27_spill] sm:$0xff]  ;;  %v5361_v36 = vld [vmem:[#allocation69_spill] sm:$0xff] }
 0x1e9   : > { %2912 = vst [vmem:[%s4860_s20 + $0x68] sm:$0xff] %v2880_v12  ;;  %vm2821_vm2 = vcmp.ge.f32.partialorder %v2789_v40, 0.0  ;;  %v2853_v61 = vmul.f32 0.01, %v2789_v40  ;;  %v2787_v6 = vadd.f32 %v4831_v14, %v2748_v43  ;;  %v2749_v22 = vmax.f32 %v2717_v17, %v4943_v33  ;;  %v3544_v1 = vpop.f32.mrb[120].mxu0  ;;  %v4993_v26 = vpop.f32.mrb[120].mxu1 }
 0x1ea   : > { %v2790_v3 = vadd.f32 %v4831_v14, %v2751_v30  ;;  %v2656_v55 = vmax.f32 %v2624_v47, %v5348_v15  ;;  %v2659_v27 = vmax.f32 %v2627_v56, %v5349_v60  ;;  %v2625_v34 = vmax.f32 %v4757_v37, %v1984_v57  ;;  %v1997_v35 = vpop.f32.mrb[121].mxu0  ;;  %v4999_v44 = vpop.f32.mrb[121].mxu1  ;;  %v5356_v51 = vld [vmem:[#allocation83_spill] sm:$0xff]  ;;  %v5360_v57 = vld [vmem:[#allocation29_spill] sm:$0xff] }
 0x1eb   : > { %v2885_v16 = vsel %vm2821_vm2, %v2789_v40, %v2853_v61  ;;  %vm2819_vm3 = vcmp.ge.f32.partialorder %v2787_v6, 0.0  ;;  %v2851_v39 = vmul.f32 0.01, %v2787_v6  ;;  %v2788_v33 = vadd.f32 %v4831_v14, %v2749_v22  ;;  %v3545_v53 = vpop.f32.mrb[122].mxu0  ;;  %v5002_v45 = vpop.f32.mrb[122].mxu1  ;;  %v5362_v43 = vld [vmem:[#allocation61_spill] sm:$0xff] }
 0x1ec   : > { %2917 = vst [vmem:[%s4860_s20 + $0x90] sm:$0xff] %v2885_v16  ;;  %vm2822_vm4 = vcmp.ge.f32.partialorder %v2790_v3, 0.0  ;;  %v2854_v21 = vmul.f32 0.01, %v2790_v3  ;;  %v2657_v31 = vmax.f32 %v2625_v34, %v5350_v63  ;;  %v2690_v37 = vmax.f32 %v2658_v10, %v5351_v49  ;;  %v2000_v58 = vpop.f32.mrb[123].mxu0  ;;  %v5007_v52 = vpop.f32.mrb[123].mxu1 }
 0x1ed   : > { %v2883_v24 = vsel %vm2819_vm3, %v2787_v6, %v2851_v39  ;;  %vm2820_vm5 = vcmp.ge.f32.partialorder %v2788_v33, 0.0  ;;  %v2852_v9 = vmul.f32 0.01, %v2788_v33  ;;  %v2688_v5 = vmax.f32 %v2656_v55, %v5352_v0  ;;  %v5363_v10 = vld [vmem:[#allocation30_spill] sm:$0xff]  ;;  %v5364_v12 = vld [vmem:[#allocation71_spill] sm:$0xff] }
 0x1ee   : > { %2915 = vst [vmem:[%s4860_s20 + $0x80] sm:$0xff] %v2883_v24  ;;  %v2886_v7 = vsel %vm2822_vm4, %v2790_v3, %v2854_v21  ;;  %v2722_v19 = vmax.f32 %v2690_v37, %v5353_v18  ;;  %v2691_v41 = vmax.f32 %v2659_v27, %v5354_v8  ;;  %v2630_v62 = vmax.f32 %v5355_v11, %v3544_v1  ;;  %v5365_v6 = vld [vmem:[#allocation31_spill] sm:$0xff]  ;;  %v5366_v1 = vld [vmem:[#allocation66_spill] sm:$0xff]  ;;  %v5367_v27 = vld [vmem:[#allocation32_spill] sm:$0xff] }
 0x1ef   : > { %2918 = vst [vmem:[%s4860_s20 + $0x98] sm:$0xff] %v2886_v7  ;;  %v2884_v32 = vsel %vm2820_vm5, %v2788_v33, %v2852_v9  ;;  %v2720_v46 = vmax.f32 %v2688_v5, %v5356_v51  ;;  %v2689_v54 = vmax.f32 %v2657_v31, %v5357_v42  ;;  %v2628_v25 = vmax.f32 %v5358_v2, %v1997_v35  ;;  %v5368_v35 = vld [vmem:[#allocation68_spill] sm:$0xff]  ;;  %v5369_v21 = vld [vmem:[#allocation63_spill] sm:$0xff]  ;;  %v5371_v11 = vld [vmem:[#allocation70_spill] sm:$0xff] }
 0x1f0   : > { %2916 = vst [vmem:[%s4860_s20 + $0x88] sm:$0xff] %v2884_v32  ;;  %v2754_v59 = vmax.f32 %v2722_v19, %v4963_v23  ;;  %v2723_v48 = vmax.f32 %v2691_v41, %v5359_v20  ;;  %v2662_v4 = vmax.f32 %v2630_v62, %v5360_v57  ;;  %v2631_v28 = vmax.f32 %v5361_v36, %v3545_v53  ;;  %v5372_v32 = vld [vmem:[#allocation33_spill] sm:$0xff]  ;;  %v5374_v2 = vld [vmem:[#allocation75_spill] sm:$0xff] }
 0x1f1   : > { %v2752_v40 = vmax.f32 %v2720_v46, %v4967_v29  ;;  %v2721_v13 = vmax.f32 %v2689_v54, %v5362_v43  ;;  %v2660_v17 = vmax.f32 %v2628_v25, %v5363_v10  ;;  %v2629_v30 = vmax.f32 %v5364_v12, %v2000_v58  ;;  %v3548_v47 = vpop.f32.mrb[124].mxu0  ;;  %v5027_v56 = vpop.f32.mrb[124].mxu1  ;;  %v5370_v58 = vld [vmem:[#allocation85_spill] sm:$0xff]  ;;  %v5377_v36 = vld [vmem:[#allocation87_spill] sm:$0xff] }
 0x1f2   : > { %v2793_v61 = vadd.f32 %v4831_v14, %v2754_v59  ;;  %v2755_v23 = vmax.f32 %v2723_v48, %v4973_v50  ;;  %v2663_v22 = vmax.f32 %v2631_v28, %v5365_v6  ;;  %v2694_v3 = vmax.f32 %v2662_v4, %v5366_v1  ;;  %v2013_v15 = vpop.f32.mrb[125].mxu0  ;;  %v5033_v55 = vpop.f32.mrb[125].mxu1  ;;  %v5375_v59 = vld [vmem:[#allocation86_spill] sm:$0xff]  ;;  %v5382_v1 = vld [vmem:[#allocation76_spill] sm:$0xff] }
 0x1f3   : > { %v2791_v29 = vadd.f32 %v4831_v14, %v2752_v40  ;;  %v2753_v60 = vmax.f32 %v2721_v13, %v4979_v38  ;;  %v2661_v34 = vmax.f32 %v2629_v30, %v5367_v27  ;;  %v2692_v16 = vmax.f32 %v2660_v17, %v5368_v35  ;;  %v3549_v39 = vpop.f32.mrb[126].mxu0  ;;  %v5039_v33 = vpop.f32.mrb[126].mxu1  ;;  %v5376_v48 = vld [vmem:[#allocation34_spill] sm:$0xff]  ;;  %v5378_v40 = vld [vmem:[#allocation35_spill] sm:$0xff]  ;;  %v5379_v17 = vld [vmem:[#allocation36_spill] sm:$0xff] }
 0x1f4   : > { %vm2825_vm6 = vcmp.ge.f32.partialorder %v2793_v61, 0.0  ;;  %v2857_v50 = vmul.f32 0.01, %v2793_v61  ;;  %v2794_v53 = vadd.f32 %v4831_v14, %v2755_v23  ;;  %v2726_v63 = vmax.f32 %v2694_v3, %v5369_v21  ;;  %v2016_v31 = vpop.f32.mrb[127].mxu0  ;;  %v5043_v49 = vpop.f32.mrb[127].mxu1  ;;  %v5380_v30 = vld [vmem:[#allocation79_spill] sm:$0xff] }
 0x1f5   : > { %vm2823_vm7 = vcmp.ge.f32.partialorder %v2791_v29, 0.0  ;;  %v2855_v38 = vmul.f32 0.01, %v2791_v29  ;;  %v2792_v37 = vadd.f32 %v4831_v14, %v2753_v60  ;;  %v2724_v24 = vmax.f32 %v2692_v16, %v5370_v58  ;;  %v5381_v6 = vld [vmem:[#allocation74_spill] sm:$0xff]  ;;  %v5385_v35 = vld [vmem:[#allocation88_spill] sm:$0xff] }
 0x1f6   : > { %v2889_v9 = vsel %vm2825_vm6, %v2793_v61, %v2857_v50  ;;  %vm2826_vm8 = vcmp.ge.f32.partialorder %v2794_v53, 0.0  ;;  %v2858_v0 = vmul.f32 0.01, %v2794_v53  ;;  %v2758_v5 = vmax.f32 %v2726_v63, %v4993_v26  ;;  %v5373_v26 = vld [vmem:[#allocation72_spill] sm:$0xff]  ;;  %v5384_v27 = vld [vmem:[#allocation38_spill] sm:$0xff] }
 0x1f7   : > { %2921 = vst [vmem:[%s4860_s20 + $0xb0] sm:$0xff] %v2889_v9  ;;  %v2887_v7 = vsel %vm2823_vm7, %v2791_v29, %v2855_v38  ;;  %vm2824_vm9 = vcmp.ge.f32.partialorder %v2792_v37, 0.0  ;;  %v2856_v18 = vmul.f32 0.01, %v2792_v37  ;;  %v2756_v19 = vmax.f32 %v2724_v24, %v4999_v44  ;;  %v5383_v29 = vld [vmem:[#allocation37_spill] sm:$0xff]  ;;  %v5388_v63 = vld [vmem:[#allocation80_spill] sm:$0xff] }
 0x1f8   : > { %2919 = vst [vmem:[%s4860_s20 + $0xa0] sm:$0xff] %v2887_v7  ;;  %v2890_v8 = vsel %vm2826_vm8, %v2794_v53, %v2858_v0  ;;  %v2797_v41 = vadd.f32 %v4831_v14, %v2758_v5  ;;  %v2695_v62 = vmax.f32 %v2663_v22, %v5371_v11  ;;  %v2634_v51 = vmax.f32 %v5372_v32, %v3548_v47  ;;  %v5387_v53 = vld [vmem:[#allocation78_spill] sm:$0xff]  ;;  %v5389_v9 = vld [vmem:[#allocation89_spill] sm:$0xff] }
 0x1f9   : > { %2922 = vst [vmem:[%s4860_s20 + $0xb8] sm:$0xff] %v2890_v8  ;;  %v2888_v46 = vsel %vm2824_vm9, %v2792_v37, %v2856_v18  ;;  %v2795_v42 = vadd.f32 %v4831_v14, %v2756_v19  ;;  %v2693_v54 = vmax.f32 %v2661_v34, %v5373_v26  ;;  %v2632_v25 = vmax.f32 %v5374_v2, %v2013_v15  ;;  %v5390_v5 = vld [vmem:[#allocation77_spill] sm:$0xff] }
 0x1fa   : > { %2920 = vst [vmem:[%s4860_s20 + $0xa8] sm:$0xff] %v2888_v46  ;;  %vm2829_vm10 = vcmp.ge.f32.partialorder %v2797_v41, 0.0  ;;  %v2861_v44 = vmul.f32 0.01, %v2797_v41  ;;  %v2727_v20 = vmax.f32 %v2695_v62, %v5375_v59  ;;  %v2666_v57 = vmax.f32 %v2634_v51, %v5376_v48 }
 0x1fb   : > { %vm2827_vm11 = vcmp.ge.f32.partialorder %v2795_v42, 0.0  ;;  %v2859_v4 = vmul.f32 0.01, %v2795_v42  ;;  %v2725_v28 = vmax.f32 %v2693_v54, %v5377_v36  ;;  %v2664_v43 = vmax.f32 %v2632_v25, %v5378_v40 }
 0x1fc   : > { %v2893_v13 = vsel %vm2829_vm10, %v2797_v41, %v2861_v44  ;;  %v2759_v10 = vmax.f32 %v2727_v20, %v5002_v45  ;;  %v2635_v12 = vmax.f32 %v5379_v17, %v3549_v39  ;;  %v2633_v47 = vmax.f32 %v5380_v30, %v2016_v31  ;;  %v5386_v39 = vld [vmem:[#allocation73_spill] sm:$0xff] }
 0x1fd   : > { %2925 = vst [vmem:[%s4860_s20 + $0xd0] sm:$0xff] %v2893_v13  ;;  %v2891_v61 = vsel %vm2827_vm11, %v2795_v42, %v2859_v4  ;;  %v2757_v23 = vmax.f32 %v2725_v28, %v5007_v52  ;;  %v2698_v22 = vmax.f32 %v2666_v57, %v5381_v6  ;;  %v2696_v3 = vmax.f32 %v2664_v43, %v5382_v1 }
 0x1fe   : > { %2923 = vst [vmem:[%s4860_s20 + $0xc0] sm:$0xff] %v2891_v61  ;;  %v2798_v15 = vadd.f32 %v4831_v14, %v2759_v10  ;;  %v2667_v60 = vmax.f32 %v2635_v12, %v5383_v29  ;;  %v2665_v45 = vmax.f32 %v2633_v47, %v5384_v27 }
 0x1ff   : > { %v2796_v34 = vadd.f32 %v4831_v14, %v2757_v23  ;;  %v2730_v16 = vmax.f32 %v2698_v22, %v5385_v35  ;;  %v2728_v50 = vmax.f32 %v2696_v3, %v5386_v39 }
 0x200   : > { %vm2830_vm12 = vcmp.ge.f32.partialorder %v2798_v15, 0.0  ;;  %v2862_v52 = vmul.f32 0.01, %v2798_v15  ;;  %v2699_v21 = vmax.f32 %v2667_v60, %v5387_v53  ;;  %v2697_v31 = vmax.f32 %v2665_v45, %v5388_v63 }
 0x201   : > { %vm2828_vm13 = vcmp.ge.f32.partialorder %v2796_v34, 0.0  ;;  %v2860_v38 = vmul.f32 0.01, %v2796_v34  ;;  %v2762_v37 = vmax.f32 %v2730_v16, %v5027_v56  ;;  %v2760_v58 = vmax.f32 %v2728_v50, %v5033_v55 }
 0x202   : > { %v2894_v24 = vsel %vm2830_vm12, %v2798_v15, %v2862_v52  ;;  %v2731_v0 = vmax.f32 %v2699_v21, %v5389_v9  ;;  %v2729_v7 = vmax.f32 %v2697_v31, %v5390_v5 }
 0x203   : > { %2926 = vst [vmem:[%s4860_s20 + $0xd8] sm:$0xff] %v2894_v24  ;;  %v2892_v18 = vsel %vm2828_vm13, %v2796_v34, %v2860_v38  ;;  %v2801_v19 = vadd.f32 %v4831_v14, %v2762_v37  ;;  %v2799_v8 = vadd.f32 %v4831_v14, %v2760_v58 }
 0x204   : > { %2924 = vst [vmem:[%s4860_s20 + $0xc8] sm:$0xff] %v2892_v18  ;;  %v2763_v41 = vmax.f32 %v2731_v0, %v5039_v33  ;;  %v2761_v56 = vmax.f32 %v2729_v7, %v5043_v49 }
 0x205   : > { %vm2833_vm14 = vcmp.ge.f32.partialorder %v2801_v19, 0.0  ;;  %v2865_v55 = vmul.f32 0.01, %v2801_v19  ;;  %vm2831_vm15 = vcmp.ge.f32.partialorder %v2799_v8, 0.0  ;;  %v2863_v11 = vmul.f32 0.01, %v2799_v8 }
 0x206   : > { %v2802_v62 = vadd.f32 %v4831_v14, %v2763_v41  ;;  %v2800_v32 = vadd.f32 %v4831_v14, %v2761_v56 }
 0x207   : > { %v2897_v51 = vsel %vm2833_vm14, %v2801_v19, %v2865_v55  ;;  %v2895_v46 = vsel %vm2831_vm15, %v2799_v8, %v2863_v11 }
 0x208   : > { %2929 = vst [vmem:[%s4860_s20 + $0xf0] sm:$0xff] %v2897_v51  ;;  %2927 = vst [vmem:[%s4860_s20 + $0xe0] sm:$0xff] %v2895_v46  ;;  %vm2834_vm0 = vcmp.ge.f32.partialorder %v2802_v62, 0.0  ;;  %v2866_v33 = vmul.f32 0.01, %v2802_v62  ;;  %vm2832_vm1 = vcmp.ge.f32.partialorder %v2800_v32, 0.0 }
 0x209   : > { %v2864_v49 = vmul.f32 0.01, %v2800_v32 }
 0x20a   : > { %v2898_v14 = vsel %vm2834_vm0, %v2802_v62, %v2866_v33 }
 0x20b   : > { %v2896_v42 = vsel %vm2832_vm1, %v2800_v32, %v2864_v49  ;;  %2930 = vst [vmem:[%s4860_s20 + $0xf8] sm:$0xff] %v2898_v14 }
 0x20c   : > { %2928 = vst [vmem:[%s4860_s20 + $0xe8] sm:$0xff] %v2896_v42 }
 0x20d   : > { %3874 = shalt.err (!%p3871_p3)
}
 0x20e   : > { %s3875_s6 = scalar_lea.hbm %s5098_s27, 4096  ;;  %s3879_s9 = scalar_lea.hbm %s5150_s3, 8192 }
 0x20f   : > { %p3876_p4 = scmp.ne.s32.totalorder %s5098_s27, %s3875_s6  ;;  %p3880_p9 = scmp.lt.u32.totalorder %s5098_s27, %s5150_s3 }
 0x210   : > { %p3881_p10 = scmp.lt.u32.totalorder %s3879_s9, %s3875_s6  ;;  %p3883_p12 = scmp.lt.u32.totalorder %s3875_s6, %s5098_s27 }
 0x211   : > { %p3877_p7 = pnand %p3876_p4, %p3986_p5 }
 0x212   : > { %p3882_p11 = por %p3881_p10, %p3880_p9 }
 0x213   : > { %p3878_p8 = pneg %p3877_p7 }
 0x214   : > { %p3884_p13 = por %p3883_p12, %p3882_p11 }
 0x216   : > { %p3885_p0 = pnand %p3884_p13, %p3878_p8 }
 0x218   : > { %3888 = shalt.err (!%p3885_p0)
}
 0x219   : > { %s3926_s17 = smov 128   ;;  %s3927_s19 = smov 8  }
 0x21a   : > { %3688 = dma.vmem_to_hbm [thread:$0]  (%p3986_p5), %s5100_s25, 4096, %s5098_s27, %s5106_s28, %s3926_s17, %s3926_s17, %s3927_s19  }
 0x21b PF: > { %p3694_p1 = scmp.ge.s32.totalorder %s3923_s15, 2  ;;  %s2960_s20 = sand.u32 1, %s3911_s12  }
 0x21c   : > { %s2961_s24 = scalar_lea.sflag [#allocation3], %s2960_s20 }
 0x21d   : > { %p3691_p2 = pnand %p3694_p1, %p3990_p6 }
 0x21f   : > { %3906 = dma.done.wait (!%p3691_p2), %s2961_s24, 4096  }
 0x220   : > { %3908 = vsyncadd (!%p3691_p2), %s2961_s24, 4294963200  ;;  %p13_p3 = scmp.ge.s32.totalorder %s3973_s18, 4   ;;  %s5391_s12 = smov %s3915_s13 }
 0x221   : > { %s5392_s13 = smov %s3919_s14  ;;  %s5393_s14 = smov %s3984_s21 }
 0x222   : > { %s5394_s15 = smov %s3973_s18  ;;  %15 = sbr.rel (!%p13_p3) target bundleno = 3 (0x3), region = 67 }
 0x229   :  { %2966 = vsyncpa [#allocation3], 1 }
 0x22a   :  { %2968 = vsyncpa [#allocation3 + $0x1], 1 }

</bundles_post_ra>
